<compile_context>
chip_gen: v7x
topology: tpu7x:2x2x1
jax: 0.10.0
libtpu: 0.0.40
codegen_flags: <defaults>
</compile_context>

<pallas_src>
import functools
import math

import jax
import jax.numpy as jnp
import numpy as np
from jax.experimental import pallas as pl
from jax.experimental.pallas import tpu as pltpu

LANE = 128


def _round_up(x, m):
    return (x + m - 1) // m * m


def _pick_tile(n, target, mult):
    """Largest d with d | n, d <= target, d % mult == 0.  Returns 0 if none exists."""
    best = 0
    d = 1
    while d * d <= n:
        if n % d == 0:
            for c in (d, n // d):
                if c <= target and c % mult == 0 and c > best:
                    best = c
        d += 1
    return best


def _vmem_budget_bytes():
    """Generation-aware scoped-VMEM budget (leave DMA/double-buffer headroom)."""
    cap = 64 * 1024 * 1024            # conservative default (v7x per-TC VMEM)
    try:
        cap = int(pltpu.get_tpu_info().vmem_capacity_bytes)
    except Exception:
        pass
    # ~96 MiB on 128 MiB parts (v5e/v6e), ~40 MiB on 64 MiB parts (v7x).
    return max(min(3 * cap // 4, cap - 24 * 1024 * 1024), 16 * 1024 * 1024)


# ---------------------------------------------------------------------------
# Kernel 1: fused phi|g projection (packed lanes) + (1,2,2) max-pool epilogue
# ---------------------------------------------------------------------------
def _proj_pool_kernel(x_ref, w_ref, b_ref, out_ref, pg_ref, *, w_dim, cpg):
    tr = x_ref.shape[0]               # rows in this tile (multiple of 2*w_dim and of 8)
    s = tr // (2 * w_dim)             # pooling super-rows (pairs of image rows)
    wh = w_dim // 2
    # One bf16 MXU matmul produces phi|g packed on the lane axis; f32 accumulate.
    proj = jnp.dot(x_ref[...], w_ref[...], preferred_element_type=jnp.float32)
    # Stage in f32 VMEM so the 2x2 max-pool can use stride-2 sublane reads
    # (value-level packed-dtype strided reads are riskier to lower).
    pg_ref[...] = proj
    # max over the w-pair: rows alternate w-even / w-odd (W is even).
    wmax = jnp.maximum(pg_ref[pl.ds(0, tr // 2, stride=2), :],
                       pg_ref[pl.ds(1, tr // 2, stride=2), :])       # (tr//2, cpg)
    # regroup rows as (super-row, [h-even block | h-odd block]) and max over the h-pair.
    wmax3 = wmax.reshape(s, w_dim, cpg)
    pooled = jnp.maximum(wmax3[:, :wh, :], wmax3[:, wh:, :])         # (s, wh, cpg)
    # Bias is per-channel (uniform inside every pooling window), so adding it after the
    # max is exact and 4x cheaper than adding it to the full-resolution projection.
    out_ref[...] = (pooled + b_ref[...]).astype(out_ref.dtype)


def _fused_proj_pool(x2d, w_pg, b_pg, *, W, cpg, row_tile, vmem_limit):
    R, c_pad = x2d.shape
    s_tile = row_tile // (2 * W)
    wh = W // 2
    total_s = R // (2 * W)
    kernel = functools.partial(_proj_pool_kernel, w_dim=W, cpg=cpg)
    return pl.pallas_call(
        kernel,
        out_shape=jax.ShapeDtypeStruct((total_s, wh, cpg), jnp.bfloat16),
        grid=(R // row_tile,),
        in_specs=[
            pl.BlockSpec((row_tile, c_pad), lambda i: (i, 0)),
            pl.BlockSpec((c_pad, cpg), lambda i: (0, 0)),
            pl.BlockSpec((1, cpg), lambda i: (0, 0)),
        ],
        out_specs=pl.BlockSpec((s_tile, wh, cpg), lambda i: (i, 0, 0)),
        scratch_shapes=[pltpu.VMEM((row_tile, cpg), jnp.float32)],
        compiler_params=pltpu.CompilerParams(
            dimension_semantics=("parallel",),
            vmem_limit_bytes=vmem_limit),
    )(x2d, w_pg, b_pg)


# ---------------------------------------------------------------------------
# Kernel 2: kvf = (pooled^T @ pooled) / M  — phi^T @ g lives in an off-diagonal block
# ---------------------------------------------------------------------------
def _kv_kernel(pg_ref, kv_ref, acc_ref, *, inv_m):
    @pl.when(pl.program_id(1) == 0)
    def _():
        acc_ref[...] = jnp.zeros_like(acc_ref)

    blk = pg_ref[0]                                        # (m_tile, cpg) bf16
    acc_ref[...] += jax.lax.dot_general(
        blk, blk, (((0,), (0,)), ((), ())), preferred_element_type=jnp.float32)

    @pl.when(pl.program_id(1) == pl.num_programs(1) - 1)
    def _():
        kv_ref[...] = (acc_ref[...] * inv_m)[None]


def _kv_accumulate(pg_b, *, m_tile, vmem_limit):
    B, M, cpg = pg_b.shape
    kernel = functools.partial(_kv_kernel, inv_m=1.0 / M)
    return pl.pallas_call(
        kernel,
        out_shape=jax.ShapeDtypeStruct((B, cpg, cpg), jnp.float32),
        grid=(B, M // m_tile),
        in_specs=[pl.BlockSpec((1, m_tile, cpg), lambda b, k: (b, k, 0))],
        out_specs=pl.BlockSpec((1, cpg, cpg), lambda b, k: (b, 0, 0)),
        scratch_shapes=[pltpu.VMEM((cpg, cpg), jnp.float32)],
        compiler_params=pltpu.CompilerParams(
            dimension_semantics=("parallel", "arbitrary"),
            vmem_limit_bytes=vmem_limit),
    )(pg_b)


# ---------------------------------------------------------------------------
# Kernel 3: z = x @ Wcomb[b] + bcomb[b] + x   (attention apply + W + BN + residual)
# ---------------------------------------------------------------------------
def _apply_kernel(x_ref, w_ref, b_ref, z_ref):
    xv = x_ref[0]                                                     # (n_tile, c_pad) bf16
    acc = jnp.dot(xv, w_ref[0], preferred_element_type=jnp.float32)   # single MXU matmul
    z_ref[...] = (acc + b_ref[0] + xv)[None].astype(z_ref.dtype)


def _apply_out_residual(x_b, w_comb, b_comb, *, n_tile, vmem_limit):
    B, N, c_pad = x_b.shape
    cost = pl.CostEstimate(
        flops=int(2 * B * N * c_pad * c_pad),
        transcendentals=0,
        bytes_accessed=int(2 * x_b.size * 2 + w_comb.size * 2 + b_comb.size * 4),
    )
    return pl.pallas_call(
        _apply_kernel,
        out_shape=jax.ShapeDtypeStruct((B, N, c_pad), jnp.bfloat16),
        grid=(B, N // n_tile),
        in_specs=[
            pl.BlockSpec((1, n_tile, c_pad), lambda b, i: (b, i, 0)),
            pl.BlockSpec((1, c_pad, c_pad), lambda b, i: (b, 0, 0)),
            pl.BlockSpec((1, 1, c_pad), lambda b, i: (b, 0, 0)),
        ],
        out_specs=pl.BlockSpec((1, n_tile, c_pad), lambda b, i: (b, i, 0)),
        input_output_aliases={0: 0},          # write z in place of the bf16 x buffer
        cost_estimate=cost,
        compiler_params=pltpu.CompilerParams(
            dimension_semantics=("parallel", "parallel"),
            vmem_limit_bytes=vmem_limit),
    )(x_b, w_comb, b_comb)


# ---------------------------------------------------------------------------
# Full forward (glue + Pallas kernels)
# ---------------------------------------------------------------------------
def nonlocal_block_forward(x, p, eps=1e-5, *, row_tile_rows=None,
                           n_tile_rows=None, m_tile_rows=None):
    B, C, T, H, W = x.shape
    Ci = p["w_theta"].shape[0]
    # TODO(synk): odd H/W (PyTorch MaxPool3d floors) and return_nl_map are unsupported;
    # the associativity rewrite never materializes the (N, M) attention map.
    if H % 2 or W % 2:
        raise ValueError("sub_sample (1,2,2) pooling path requires even H and W")
    N = T * H * W
    M = T * (H // 2) * (W // 2)
    R = B * N

    c_pad = _round_up(C, LANE)            # lane-padded in_channels
    cpg = _round_up(2 * Ci, LANE)         # packed phi|g lane group

    # --- generation-aware VMEM budget and tile targets -------------------------------
    budget = _vmem_budget_bytes()
    stream = (6 * budget) // 10           # VMEM allowed for streamed (double-buffered) tiles

    k1_per_row = 4 * c_pad + 5 * cpg      # x bf16 dbuf + f32 scratch + pooled bf16 dbuf
    row_target = max(8, min(stream // k1_per_row, 8192))
    if row_tile_rows is not None:
        row_target = min(row_target, row_tile_rows)

    k2_per_row = 4 * cpg                  # pooled bf16 dbuf
    m_target = max(8, min((stream - 8 * cpg * cpg) // k2_per_row, 8192))
    if m_tile_rows is not None:
        m_target = min(m_target, m_tile_rows)

    k3_per_row = 8 * c_pad                # x bf16 dbuf + z bf16 dbuf
    n_target = max(8, min((stream - 4 * c_pad * c_pad) // k3_per_row, 8192))
    if n_tile_rows is not None:
        n_target = min(n_target, n_tile_rows)

    # --- channels-last + lane padding + bf16 (single XLA pass over x) ----------------
    # TODO(synk): this NCDHW<->channels-last transpose/pad is wrapper-side HBM traffic
    # that disappears only if the surrounding model keeps activations channels-last.
    x_cl = jnp.transpose(x, (0, 2, 3, 4, 1))
    x_pad = jnp.pad(x_cl, ((0, 0),) * 4 + ((0, c_pad - C),)).astype(jnp.bfloat16)
    x2d = x_pad.reshape(R, c_pad)

    # packed [phi | g] projection weight (bf16) and bias (f32)
    w_pg = jnp.concatenate([p["w_phi"].T, p["w_g"].T], axis=1)            # (C, 2*Ci)
    w_pg = jnp.pad(w_pg, ((0, c_pad - C), (0, cpg - 2 * Ci))).astype(jnp.bfloat16)
    b_pg = jnp.pad(jnp.concatenate([p["b_phi"], p["b_g"]]),
                   (0, cpg - 2 * Ci))[None, :].astype(jnp.float32)

    # --- kernel 1: fused projection + (1,2,2) max-pool --------------------------------
    two_w = 2 * W
    unit = two_w * 8 // math.gcd(two_w, 8)   # tile covers whole 2x2 windows, 8-aligned
    if R % unit != 0:
        # TODO(synk): only hit when W % 4 != 0 and B*T*H/2 is odd; needs row masking.
        raise ValueError(f"cannot sublane-align pooling tiles: R={R}, unit={unit}")
    u_tile = _pick_tile(R // unit, max(1, row_target // unit), mult=1)    # always >= 1
    row_tile = u_tile * unit
    pooled = _fused_proj_pool(x2d, w_pg, b_pg, W=W, cpg=cpg,
                              row_tile=row_tile, vmem_limit=budget)
    pg_b = pooled.reshape(B, M, cpg)

    # --- kernel 2: kvf = pooled^T @ pooled / M ----------------------------------------
    m_tile = _pick_tile(M, m_target, mult=8)
    if m_tile == 0:
        if M * k2_per_row <= stream:
            m_tile = M                       # full-extent block is small enough
        else:
            raise ValueError(f"no sublane-aligned tile for M={M} within VMEM budget")
    kvf = _kv_accumulate(pg_b, m_tile=m_tile, vmem_limit=budget)     # (B, cpg, cpg) f32

    # --- tiny f32 XLA combine: fold theta, kv, W conv and eval-mode BN ---------------
    kv = kvf[:, :Ci, Ci:2 * Ci]                                      # phi^T @ g / M
    scale = p["bn_gamma"] / jnp.sqrt(p["bn_var"] + eps)
    w_w_eff = p["w_w"].T * scale[None, :]                            # (Ci, C)
    kvw = jnp.einsum("bij,jc->bic", kv, w_w_eff)                     # (B, Ci, C)
    w_comb = jnp.einsum("ci,bio->bco", p["w_theta"].T, kvw)          # (B, C, C)
    b_comb = (jnp.einsum("i,bio->bo", p["b_theta"], kvw)
              + (p["b_w"] - p["bn_mean"]) * scale + p["bn_beta"])    # (B, C)
    w_comb = jnp.pad(w_comb, ((0, 0), (0, c_pad - C), (0, c_pad - C))).astype(jnp.bfloat16)
    b_comb = jnp.pad(b_comb, ((0, 0), (0, c_pad - C)))[:, None, :].astype(jnp.float32)

    # --- kernel 3: z = x @ Wcomb + bcomb + x ------------------------------------------
    n_tile = _pick_tile(N, n_target, mult=8)
    if n_tile == 0:
        if N * k3_per_row <= stream:
            n_tile = N
        else:
            raise ValueError(f"no sublane-aligned tile for N={N} within VMEM budget")
    z_pad = _apply_out_residual(x_pad.reshape(B, N, c_pad), w_comb, b_comb,
                                n_tile=n_tile, vmem_limit=budget)

    z = z_pad[..., :C].reshape(B, T, H, W, C).transpose(0, 4, 1, 2, 3)
    return z.astype(x.dtype)


# ---------------------------------------------------------------------------
# Pure-JAX reference (mirrors the PyTorch forward exactly, NCDHW, f32)
# ---------------------------------------------------------------------------
def reference_forward(x, p, eps=1e-5):
    B, C, T, H, W = x.shape

    def conv1(v, w, b):
        return jnp.einsum("bcthw,oc->bothw", v, w) + b[None, :, None, None, None]

    def pool(v):  # MaxPool3d((1,2,2))
        Bv, Cv, Tv, Hv, Wv = v.shape
        return jnp.max(v.reshape(Bv, Cv, Tv, Hv // 2, 2, Wv // 2, 2), axis=(4, 6))

    g_x = pool(conv1(x, p["w_g"], p["b_g"])).reshape(B, p["w_g"].shape[0], -1)
    g_x = g_x.transpose(0, 2, 1)
    theta_x = conv1(x, p["w_theta"], p["b_theta"]).reshape(B, p["w_theta"].shape[0], -1)
    theta_x = theta_x.transpose(0, 2, 1)
    phi_x = pool(conv1(x, p["w_phi"], p["b_phi"])).reshape(B, p["w_phi"].shape[0], -1)
    f = jnp.einsum("bnc,bcm->bnm", theta_x, phi_x)
    f_div = f / f.shape[-1]
    y = jnp.einsum("bnm,bmc->bnc", f_div, g_x)
    y = y.transpose(0, 2, 1).reshape(B, p["w_theta"].shape[0], T, H, W)
    wy = conv1(y, p["w_w"], p["b_w"])
    scale = p["bn_gamma"] / jnp.sqrt(p["bn_var"] + eps)
    wy = wy * scale[None, :, None, None, None] + (
        p["bn_beta"] - p["bn_mean"] * scale)[None, :, None, None, None]
    return wy + x


if __name__ == "__main__":
    # Small shapes consistent with the module: (b, c, t, h, w)
    B, C, T, H, W = 2, 64, 2, 16, 16
    Ci = C // 2  # inter_channels = in_channels // 2

    key = jax.random.PRNGKey(0)
    ks = jax.random.split(key, 13)
    nrm = lambda k, s: 0.2 * jax.random.normal(k, s, jnp.float32)

    # NOTE: the PyTorch __init__ zeroes the BN gamma/beta (identity residual at init);
    # here we use nonzero deterministic params so the full path is exercised.
    params = {
        "w_g": nrm(ks[0], (Ci, C)),     "b_g": nrm(ks[1], (Ci,)),
        "w_theta": nrm(ks[2], (Ci, C)), "b_theta": nrm(ks[3], (Ci,)),
        "w_phi": nrm(ks[4], (Ci, C)),   "b_phi": nrm(ks[5], (Ci,)),
        "w_w": nrm(ks[6], (C, Ci)),     "b_w": nrm(ks[7], (C,)),
        "bn_gamma": 1.0 + nrm(ks[8], (C,)),
        "bn_beta": nrm(ks[9], (C,)),
        "bn_mean": nrm(ks[10], (C,)),
        "bn_var": 0.5 + jnp.abs(nrm(ks[11], (C,))),
    }
    x = jax.random.normal(ks[12], (B, C, T, H, W), jnp.float32)

    # Small tile targets so the tiled grids and the multi-step kv reduction are
    # exercised even at these toy shapes (defaults are VMEM-budget derived).
    fwd = jax.jit(functools.partial(nonlocal_block_forward,
                                    row_tile_rows=256, n_tile_rows=256,
                                    m_tile_rows=64))
    z = jax.block_until_ready(fwd(x, params))
    z_ref = reference_forward(x, params)

    assert z.shape == (B, C, T, H, W)
    z_np = np.asarray(z, dtype=np.float32)
    ref_np = np.asarray(z_ref, dtype=np.float32)
    # bf16 MXU inputs with f32 accumulation vs an all-f32 reference: compare with a
    # relative-to-max error bound (typical observed error is a few 1e-3 of the range).
    rel_err = np.max(np.abs(z_np - ref_np)) / max(float(np.max(np.abs(ref_np))), 1e-6)
    assert rel_err < 2e-2, f"mismatch vs reference: rel_err={rel_err}"
    print("KERNEL_OK")
</pallas_src>

<mosaic_0001>
module attributes {stable_mosaic.version = 11 : i64} {
  func.func @_proj_pool_kernel(%arg0: i32, %arg1: memref<256x128xbf16, #tpu.memory_space<vmem>>, %arg2: memref<128x128xbf16, #tpu.memory_space<vmem>>, %arg3: memref<1x128xf32, #tpu.memory_space<vmem>>, %arg4: memref<8x8x128xbf16, #tpu.memory_space<vmem>>, %arg5: memref<256x128xf32, #tpu.memory_space<vmem>>) attributes {dimension_semantics = [#tpu.dimension_semantics<parallel>], iteration_bounds = array<i64: 4>, scalar_prefetch = 0 : i64, scratch_operands = 1 : i64, tpu.core_type = #tpu.core_type<tc>, window_params = [{transform_indices = @transform_0, window_bounds = array<i64: 256, 128>}, {pipeline_mode = #tpu.pipeline_mode<synchronous>, transform_indices = @transform_1, window_bounds = array<i64: 128, 128>}, {pipeline_mode = #tpu.pipeline_mode<synchronous>, transform_indices = @transform_2, window_bounds = array<i64: 1, 128>}, {transform_indices = @transform_3, window_bounds = array<i64: 8, 8, 128>}]} {
    %c0 = arith.constant 0 : index
    %c0_0 = arith.constant 0 : index
    %0 = vector.load %arg1[%c0, %c0_0] : memref<256x128xbf16, #tpu.memory_space<vmem>>, vector<256x128xbf16>
    %c0_1 = arith.constant 0 : index
    %c0_2 = arith.constant 0 : index
    %1 = vector.load %arg2[%c0_1, %c0_2] : memref<128x128xbf16, #tpu.memory_space<vmem>>, vector<128x128xbf16>
    %cst = arith.constant dense<0.000000e+00> : vector<256x128xf32>
    %2 = tpu.matmul %0, %1, %cst {dimension_numbers = #tpu.dot_dimension_numbers<[1], [0], [0], [1], [0, 0, 1, 1], [], []>} : vector<256x128xbf16>, vector<128x128xbf16>, vector<256x128xf32> -> vector<256x128xf32>
    %c0_3 = arith.constant 0 : index
    %c0_4 = arith.constant 0 : index
    %3 = vector.load %arg5[%c0_3, %c0_4] : memref<256x128xf32, #tpu.memory_space<vmem>>, vector<256x128xf32>
    tpu.vector_store %arg5[%c0_3, %c0_4], %2 {strides = array<i32>} : memref<256x128xf32, #tpu.memory_space<vmem>>, vector<256x128xf32>,
    %c0_5 = arith.constant 0 : index
    %c0_6 = arith.constant 0 : index
    %4 = tpu.strided_load %arg5[%c0_5, %c0_6] {strides = array<i32: 2, 1>} : memref<256x128xf32, #tpu.memory_space<vmem>>, vector<128x128xf32>
    %c1 = arith.constant 1 : index
    %c0_7 = arith.constant 0 : index
    %5 = tpu.strided_load %arg5[%c1, %c0_7] {strides = array<i32: 2, 1>} : memref<256x128xf32, #tpu.memory_space<vmem>>, vector<128x128xf32>
    %6 = arith.maximumf %4, %5 : vector<128x128xf32>
    %7 = vector.shape_cast %6 : vector<128x128xf32> to vector<8x16x128xf32>
    %8 = vector.extract_strided_slice %7 {offsets = [0, 0, 0], sizes = [8, 8, 128], strides = [1, 1, 1]} : vector<8x16x128xf32> to vector<8x8x128xf32>
    %9 = vector.extract_strided_slice %7 {offsets = [0, 8, 0], sizes = [8, 8, 128], strides = [1, 1, 1]} : vector<8x16x128xf32> to vector<8x8x128xf32>
    %10 = arith.maximumf %8, %9 : vector<8x8x128xf32>
    %c0_8 = arith.constant 0 : index
    %c0_9 = arith.constant 0 : index
    %11 = vector.load %arg3[%c0_8, %c0_9] : memref<1x128xf32, #tpu.memory_space<vmem>>, vector<1x128xf32>
    %12 = vector.shape_cast %11 : vector<1x128xf32> to vector<1x1x128xf32>
    %13 = vector.broadcast %12 : vector<1x1x128xf32> to vector<8x8x128xf32>
    %14 = arith.addf %10, %13 : vector<8x8x128xf32>
    %15 = arith.truncf %14 : vector<8x8x128xf32> to vector<8x8x128xbf16>
    %c0_10 = arith.constant 0 : index
    %c0_11 = arith.constant 0 : index
    %c0_12 = arith.constant 0 : index
    %16 = vector.load %arg4[%c0_10, %c0_11, %c0_12] : memref<8x8x128xbf16, #tpu.memory_space<vmem>>, vector<8x8x128xbf16>
    tpu.vector_store %arg4[%c0_10, %c0_11, %c0_12], %15 {strides = array<i32>} : memref<8x8x128xbf16, #tpu.memory_space<vmem>>, vector<8x8x128xbf16>,
    return
  }
  func.func @transform_0(%arg0: i32) -> (i32, i32) {
    %c0_i32 = arith.constant 0 : i32
    %c0_i32_0 = arith.constant 0 : i32
    return %arg0, %c0_i32 : i32, i32
  }
  func.func @transform_1(%arg0: i32) -> (i32, i32) {
    %c0_i32 = arith.constant 0 : i32
    %c0_i32_0 = arith.constant 0 : i32
    %c0_i32_1 = arith.constant 0 : i32
    return %c0_i32, %c0_i32_0 : i32, i32
  }
  func.func @transform_2(%arg0: i32) -> (i32, i32) {
    %c0_i32 = arith.constant 0 : i32
    %c0_i32_0 = arith.constant 0 : i32
    %c0_i32_1 = arith.constant 0 : i32
    return %c0_i32, %c0_i32_0 : i32, i32
  }
  func.func @transform_3(%arg0: i32) -> (i32, i32, i32) {
    %c0_i32 = arith.constant 0 : i32
    %c0_i32_0 = arith.constant 0 : i32
    %c0_i32_1 = arith.constant 0 : i32
    return %arg0, %c0_i32, %c0_i32_0 : i32, i32, i32
  }
}

module attributes {stable_mosaic.version = 11 : i64} {
  func.func @_kv_kernel(%arg0: i32, %arg1: i32, %arg2: memref<1x64x128xbf16, #tpu.memory_space<vmem>>, %arg3: memref<1x128x128xf32, #tpu.memory_space<vmem>>, %arg4: memref<128x128xf32, #tpu.memory_space<vmem>>) attributes {dimension_semantics = [#tpu.dimension_semantics<parallel>, #tpu.dimension_semantics<arbitrary>], iteration_bounds = array<i64: 2, 2>, scalar_prefetch = 0 : i64, scratch_operands = 1 : i64, tpu.core_type = #tpu.core_type<tc>, window_params = [{transform_indices = @transform_0, window_bounds = array<i64: 1, 64, 128>}, {transform_indices = @transform_1, window_bounds = array<i64: 1, 128, 128>}]} {
    %c0_i32 = arith.constant 0 : i32
    %0 = arith.cmpi eq, %arg1, %c0_i32 : i32
    %1 = arith.extui %0 : i1 to i32
    %c0_i32_0 = arith.constant 0 : i32
    %2 = arith.cmpi ne, %1, %c0_i32_0 : i32
    scf.if %2 {
      %cst_8 = arith.constant 0.000000e+00 : f32
      %12 = vector.broadcast %cst_8 : f32 to vector<128x128xf32>
      %c0_9 = arith.constant 0 : index
      %c0_10 = arith.constant 0 : index
      %13 = vector.load %arg4[%c0_9, %c0_10] : memref<128x128xf32, #tpu.memory_space<vmem>>, vector<128x128xf32>
      tpu.vector_store %arg4[%c0_9, %c0_10], %12 {strides = array<i32>} : memref<128x128xf32, #tpu.memory_space<vmem>>, vector<128x128xf32>,
    } else {
    }
    %c0 = arith.constant 0 : index
    %c0_1 = arith.constant 0 : index
    %c0_2 = arith.constant 0 : index
    %3 = vector.load %arg2[%c0, %c0_1, %c0_2] : memref<1x64x128xbf16, #tpu.memory_space<vmem>>, vector<1x64x128xbf16>
    %4 = vector.shape_cast %3 : vector<1x64x128xbf16> to vector<64x128xbf16>
    %c0_3 = arith.constant 0 : index
    %c0_4 = arith.constant 0 : index
    %5 = vector.load %arg4[%c0_3, %c0_4] : memref<128x128xf32, #tpu.memory_space<vmem>>, vector<128x128xf32>
    %cst = arith.constant dense<0.000000e+00> : vector<128x128xf32>
    %6 = tpu.matmul %4, %4, %cst {dimension_numbers = #tpu.dot_dimension_numbers<[0], [0], [1], [1], [0, 1, 1, 1], [], []>} : vector<64x128xbf16>, vector<64x128xbf16>, vector<128x128xf32> -> vector<128x128xf32>
    %7 = arith.addf %5, %6 : vector<128x128xf32>
    %c0_5 = arith.constant 0 : index
    %c0_6 = arith.constant 0 : index
    %8 = vector.load %arg4[%c0_5, %c0_6] : memref<128x128xf32, #tpu.memory_space<vmem>>, vector<128x128xf32>
    tpu.vector_store %arg4[%c0_5, %c0_6], %7 {strides = array<i32>} : memref<128x128xf32, #tpu.memory_space<vmem>>, vector<128x128xf32>,
    %c1_i32 = arith.constant 1 : i32
    %9 = arith.cmpi eq, %arg1, %c1_i32 : i32
    %10 = arith.extui %9 : i1 to i32
    %c0_i32_7 = arith.constant 0 : i32
    %11 = arith.cmpi ne, %10, %c0_i32_7 : i32
    scf.if %11 {
      %c0_8 = arith.constant 0 : index
      %c0_9 = arith.constant 0 : index
      %12 = vector.load %arg4[%c0_8, %c0_9] : memref<128x128xf32, #tpu.memory_space<vmem>>, vector<128x128xf32>
      %cst_10 = arith.constant 7.812500e-03 : f32
      %13 = vector.broadcast %cst_10 : f32 to vector<128x128xf32>
      %14 = arith.mulf %12, %13 : vector<128x128xf32>
      %15 = vector.shape_cast %14 : vector<128x128xf32> to vector<1x128x128xf32>
      %c0_11 = arith.constant 0 : index
      %c0_12 = arith.constant 0 : index
      %c0_13 = arith.constant 0 : index
      %16 = vector.load %arg3[%c0_11, %c0_12, %c0_13] : memref<1x128x128xf32, #tpu.memory_space<vmem>>, vector<1x128x128xf32>
      tpu.vector_store %arg3[%c0_11, %c0_12, %c0_13], %15 {strides = array<i32>} : memref<1x128x128xf32, #tpu.memory_space<vmem>>, vector<1x128x128xf32>,
    } else {
    }
    return
  }
  func.func @transform_0(%arg0: i32, %arg1: i32) -> (i32, i32, i32) {
    %c0_i32 = arith.constant 0 : i32
    %c0_i32_0 = arith.constant 0 : i32
    return %arg0, %arg1, %c0_i32 : i32, i32, i32
  }
  func.func @transform_1(%arg0: i32, %arg1: i32) -> (i32, i32, i32) {
    %c0_i32 = arith.constant 0 : i32
    %c0_i32_0 = arith.constant 0 : i32
    %c0_i32_1 = arith.constant 0 : i32
    return %arg0, %c0_i32, %c0_i32_0 : i32, i32, i32
  }
}

module attributes {stable_mosaic.version = 11 : i64} {
  func.func @_apply_kernel(%arg0: i32, %arg1: i32, %arg2: memref<1x256x128xbf16, #tpu.memory_space<vmem>>, %arg3: memref<1x128x128xbf16, #tpu.memory_space<vmem>>, %arg4: memref<1x1x128xf32, #tpu.memory_space<vmem>>, %arg5: memref<1x256x128xbf16, #tpu.memory_space<vmem>>) attributes {dimension_semantics = [#tpu.dimension_semantics<parallel>, #tpu.dimension_semantics<parallel>], iteration_bounds = array<i64: 2, 2>, scalar_prefetch = 0 : i64, scratch_operands = 0 : i64, tpu.core_type = #tpu.core_type<tc>, window_params = [{transform_indices = @transform_0, window_bounds = array<i64: 1, 256, 128>}, {transform_indices = @transform_1, window_bounds = array<i64: 1, 128, 128>}, {transform_indices = @transform_2, window_bounds = array<i64: 1, 1, 128>}, {transform_indices = @transform_3, window_bounds = array<i64: 1, 256, 128>}]} {
    %c0 = arith.constant 0 : index
    %c0_0 = arith.constant 0 : index
    %c0_1 = arith.constant 0 : index
    %0 = vector.load %arg2[%c0, %c0_0, %c0_1] : memref<1x256x128xbf16, #tpu.memory_space<vmem>>, vector<1x256x128xbf16>
    %1 = vector.shape_cast %0 : vector<1x256x128xbf16> to vector<256x128xbf16>
    %c0_2 = arith.constant 0 : index
    %c0_3 = arith.constant 0 : index
    %c0_4 = arith.constant 0 : index
    %2 = vector.load %arg3[%c0_2, %c0_3, %c0_4] : memref<1x128x128xbf16, #tpu.memory_space<vmem>>, vector<1x128x128xbf16>
    %3 = vector.shape_cast %2 : vector<1x128x128xbf16> to vector<128x128xbf16>
    %cst = arith.constant dense<0.000000e+00> : vector<256x128xf32>
    %4 = tpu.matmul %1, %3, %cst {dimension_numbers = #tpu.dot_dimension_numbers<[1], [0], [0], [1], [0, 0, 1, 1], [], []>} : vector<256x128xbf16>, vector<128x128xbf16>, vector<256x128xf32> -> vector<256x128xf32>
    %c0_5 = arith.constant 0 : index
    %c0_6 = arith.constant 0 : index
    %c0_7 = arith.constant 0 : index
    %5 = vector.load %arg4[%c0_5, %c0_6, %c0_7] : memref<1x1x128xf32, #tpu.memory_space<vmem>>, vector<1x1x128xf32>
    %6 = vector.shape_cast %5 : vector<1x1x128xf32> to vector<1x128xf32>
    %7 = vector.broadcast %6 : vector<1x128xf32> to vector<256x128xf32>
    %8 = arith.addf %4, %7 : vector<256x128xf32>
    %9 = arith.extf %1 : vector<256x128xbf16> to vector<256x128xf32>
    %10 = arith.addf %8, %9 : vector<256x128xf32>
    %11 = vector.shape_cast %10 : vector<256x128xf32> to vector<1x256x128xf32>
    %12 = arith.truncf %11 : vector<1x256x128xf32> to vector<1x256x128xbf16>
    %c0_8 = arith.constant 0 : index
    %c0_9 = arith.constant 0 : index
    %c0_10 = arith.constant 0 : index
    %13 = vector.load %arg5[%c0_8, %c0_9, %c0_10] : memref<1x256x128xbf16, #tpu.memory_space<vmem>>, vector<1x256x128xbf16>
    tpu.vector_store %arg5[%c0_8, %c0_9, %c0_10], %12 {strides = array<i32>} : memref<1x256x128xbf16, #tpu.memory_space<vmem>>, vector<1x256x128xbf16>,
    return
  }
  func.func @transform_0(%arg0: i32, %arg1: i32) -> (i32, i32, i32) {
    %c0_i32 = arith.constant 0 : i32
    %c0_i32_0 = arith.constant 0 : i32
    return %arg0, %arg1, %c0_i32 : i32, i32, i32
  }
  func.func @transform_1(%arg0: i32, %arg1: i32) -> (i32, i32, i32) {
    %c0_i32 = arith.constant 0 : i32
    %c0_i32_0 = arith.constant 0 : i32
    %c0_i32_1 = arith.constant 0 : i32
    return %arg0, %c0_i32, %c0_i32_0 : i32, i32, i32
  }
  func.func @transform_2(%arg0: i32, %arg1: i32) -> (i32, i32, i32) {
    %c0_i32 = arith.constant 0 : i32
    %c0_i32_0 = arith.constant 0 : i32
    %c0_i32_1 = arith.constant 0 : i32
    return %arg0, %c0_i32, %c0_i32_0 : i32, i32, i32
  }
  func.func @transform_3(%arg0: i32, %arg1: i32) -> (i32, i32, i32) {
    %c0_i32 = arith.constant 0 : i32
    %c0_i32_0 = arith.constant 0 : i32
    return %arg0, %arg1, %c0_i32 : i32, i32, i32
  }
}

</mosaic_0001>

<bundles_post_ra>
// kernel: nonlocal_block_forward.4
= control target key start
LH: loop header
LB: loop body
LE: loop exit
PB: predicated region body
PF: predicated region fallthrough
CT: control target
= control target key end

     0   :  { %s676_s6 = smov 0   ;;  %s678_s7 = smov 0   ;;  %s764_s0 = inlined_call_operand.vmem [shape: bf16[2,128,128], index: 0, kind: input, shape index: {}]   ;;  %s765_s1 = inlined_call_operand.vmem [shape: f32[2,128,128], index: 1, kind: output, shape index: {}]  }
   0x1   :  { %s680_s8 = smov 0   ;;  %s682_s9 = smov 0  }
   0x2   :  { %s684_s10 = smov 0  }
   0x3 LB: > { %s20_s11 = sadd.s32 1, %s655_s8  ;;  %s23_s12 = sadd.s32 1, %s659_s9  ;;  %s663_s10 = sphi %s684_s10, %s11_s10   ;;  %s659_s9 = sphi %s682_s9, %s769_s9   ;;  %s655_s8 = sphi %s680_s8, %s768_s8   ;;  %s651_s7 = sphi %s678_s7, %s767_s7   ;;  %s647_s6 = sphi %s676_s6, %s766_s6  }
   0x4   : > { %p21_p0 = scmp.ge.s32.totalorder %s20_s11, 2  ;;  %p512_p1 = scmp.ge.s32.totalorder %s663_s10, 1 }
   0x5   : > { %p106_p2 = scmp.lt.s32.totalorder %s663_s10, 5 }
   0x6   : > { %s771_s11 = smov (%p21_p0, %s20_s11), 0  ;;  %s773_s12 = smov (!%p21_p0, %s23_s12), %s659_s9 }
   0x7   : > { %p107_p3 = pnand %p512_p1, %p106_p2  ;;  %p25_p4 = scmp.ge.s32.totalorder %s773_s12, 2 }
   0x8   : > { %s513_s13 = sshll.u32 (!%p107_p3), %s647_s6, 3  ;;  %p131_p5 = scmp.lt.s32.totalorder (!%p107_p3), %s651_s7, 1 }
   0x9   : > { %s775_s12 = smov (%p25_p4, %s773_s12), 0  ;;  %110 = sbr.rel (%p107_p3) target bundleno = 386 (0x182), region = 24 }
   0xa   : > { %p133_p6 = scmp.lt.s32.totalorder (!%p107_p3), %s513_s13, 15  ;;  %p518_p7 = scmp.ne.s32.totalorder (!%p107_p3), %s647_s6, 0 }
  0x10   : > { %s777_s7 = smov (!%p131_p5, %s651_s7), 1  ;;  %s779_s13 = smov (!%p133_p6, %s513_s13), 15 }
  0x11   : > { %s514_s14 = sshll.u32 %s777_s7, 4  ;;  %s534_s15 = sshll.u32 %s777_s7, 7  ;;  %v665_v0 = vmov (!%p518_p7), 0.0  }
  0x12   : > { %s136_s16 = sadd.s32 %s514_s14, %s779_s13  ;;  %s712_s19 = scalar_lea.vmem %s765_s1, %s534_s15  ;;  %150 = vst [vmem:[#allocation2] sm:$0xff] (!%p518_p7), %v665_v0  ;;  %151 = vst [vmem:[#allocation2 + $0x8] sm:$0xff] (!%p518_p7), %v665_v0 }
  0x13   : > { %s515_s20 = sshll.u32 %s136_s16, 2  ;;  %149 = sbr.rel (%p518_p7) target bundleno = 26 (0x1a), region = 28  ;;  %152 = vst [vmem:[#allocation2 + $0x10] sm:$0xff] (!%p518_p7), %v665_v0  ;;  %153 = vst [vmem:[#allocation2 + $0x18] sm:$0xff] (!%p518_p7), %v665_v0 }
  0x14   : > { %s717_s23 = scalar_lea.vmem %s764_s0, %s515_s20  ;;  %154 = vst [vmem:[#allocation2 + $0x20] sm:$0xff] (!%p518_p7), %v665_v0  ;;  %155 = vst [vmem:[#allocation2 + $0x28] sm:$0xff] (!%p518_p7), %v665_v0 }
  0x15   : > { %156 = vst [vmem:[#allocation2 + $0x30] sm:$0xff] (!%p518_p7), %v665_v0  ;;  %157 = vst [vmem:[#allocation2 + $0x38] sm:$0xff] (!%p518_p7), %v665_v0 }
  0x16   : > { %158 = vst [vmem:[#allocation2 + $0x40] sm:$0xff] (!%p518_p7), %v665_v0  ;;  %159 = vst [vmem:[#allocation2 + $0x48] sm:$0xff] (!%p518_p7), %v665_v0 }
  0x17   : > { %160 = vst [vmem:[#allocation2 + $0x50] sm:$0xff] (!%p518_p7), %v665_v0  ;;  %161 = vst [vmem:[#allocation2 + $0x58] sm:$0xff] (!%p518_p7), %v665_v0 }
  0x18   : > { %162 = vst [vmem:[#allocation2 + $0x60] sm:$0xff] (!%p518_p7), %v665_v0  ;;  %163 = vst [vmem:[#allocation2 + $0x68] sm:$0xff] (!%p518_p7), %v665_v0 }
  0x19   : > { %164 = vst [vmem:[#allocation2 + $0x70] sm:$0xff] (!%p518_p7), %v665_v0  ;;  %165 = vst [vmem:[#allocation2 + $0x78] sm:$0xff] (!%p518_p7), %v665_v0 }
  0x1a PF: > { %v621_v1 = vld [vmem:[%s717_s23] sm:$0xff]   ;;  %v622_v2 = vld [vmem:[%s717_s23 + $0x8] sm:$0xff]   ;;  %v623_v3 = vld [vmem:[%s717_s23 + $0x10] sm:$0xff]   ;;  %vm230_vm0 = vcmask 523264   ;;  %p531_p8 = scmp.ne.s32.totalorder %s647_s6, 1 }
  0x1b   : > { %214 = vxpose.xlu0.c.b16.start [1/4] (short) %v621_v1, 128  ;;  %547 = vmatprep.subr.bf16.mxu0 %v621_v1  ;;  %v624_v4 = vld [vmem:[%s717_s23 + $0x18] sm:$0xff]   ;;  %v176_v13 = vld [vmem:[#allocation2 + $0x10] sm:$0xff]  ;;  %v174_v14 = vld [vmem:[#allocation2] sm:$0xff] }
  0x1c   : > { %548 = vmatpush3.bf16.msra.mxu0 %v621_v1  ;;  %571 = vmatprep.subr.bf16.mxu1 %v621_v1  ;;  %v177_v16 = vld [vmem:[#allocation2 + $0x18] sm:$0xff]  ;;  %v175_v19 = vld [vmem:[#allocation2 + $0x8] sm:$0xff]  ;;  %v180_v25 = vld [vmem:[#allocation2 + $0x30] sm:$0xff] }
  0x1d   : > { %549 = vmatprep.subr.bf16.mxu0 %v622_v2  ;;  %575 = vmatpush3.bf16.msra.mxu1 %v621_v1  ;;  %v178_v26 = vld [vmem:[#allocation2 + $0x20] sm:$0xff]  ;;  %v181_v28 = vld [vmem:[#allocation2 + $0x38] sm:$0xff]  ;;  %v179_v31 = vld [vmem:[#allocation2 + $0x28] sm:$0xff] }
  0x1e   : > { %572 = vmatprep.subr.bf16.mxu1 %v622_v2  ;;  %v184_v37 = vld [vmem:[#allocation2 + $0x50] sm:$0xff]  ;;  %v182_v38 = vld [vmem:[#allocation2 + $0x40] sm:$0xff]  ;;  %v185_v40 = vld [vmem:[#allocation2 + $0x58] sm:$0xff] }
  0x1f   : > { %215 = vxpose.xlu0.c.b16.cont [2/4] (short) %v622_v2, 128  ;;  %v183_v43 = vld [vmem:[#allocation2 + $0x48] sm:$0xff]  ;;  %v186_v50 = vld [vmem:[#allocation2 + $0x60] sm:$0xff] }
  0x20   : > { %550 = vmatpush3.bf16.msra.mxu0 %v622_v2  ;;  %v188_v49 = vld [vmem:[#allocation2 + $0x70] sm:$0xff]  ;;  %v189_v52 = vld [vmem:[#allocation2 + $0x78] sm:$0xff]  ;;  %v187_v55 = vld [vmem:[#allocation2 + $0x68] sm:$0xff] }
  0x21   : > { %551 = vmatprep.subr.bf16.mxu0 %v623_v3  ;;  %576 = vmatpush3.bf16.msra.mxu1 %v622_v2 }
  0x22   : > { %573 = vmatprep.subr.bf16.mxu1 %v623_v3 }
  0x23   : > { %216 = vxpose.xlu0.c.b16.cont [3/4] (short) %v623_v3, 128 }
  0x24   : > { %552 = vmatpush3.bf16.msra.mxu0 %v623_v3 }
  0x25   : > { %553 = vmatprep.subr.bf16.mxu0 %v624_v4  ;;  %577 = vmatpush3.bf16.msra.mxu1 %v623_v3 }
  0x26   : > { %574 = vmatprep.subr.bf16.mxu1 %v624_v4 }
  0x27   : > { %217 = vxpose.xlu0.c.b16.end [4/4] (short) %v624_v4, 128 }
  0x28   : > { %554 = vmatpush3.bf16.msra.mxu0 %v624_v4 }
  0x29   : > { %578 = vmatpush3.bf16.msra.mxu1 %v624_v4 }
  0x81   : > { %v222_v5 = vpop.trf.xlu0 }
  0x82   : > { %555 = vmatprep.mubr.msk.bf16.mxu0 %vm230_vm0, %v222_v5 }
  0x85   : > { %v223_v6 = vpop.trf.xlu0 }
  0x86   : > { %556 = vmatmul.mubr.msk.bf16.vlgmr.msra.gmra.mrb[0].mxu0 %vm230_vm0, %v223_v6 }
  0x89   : > { %v224_v7 = vpop.trf.xlu0 }
  0x8a   : > { %559 = vmatprep.mubr.msk.bf16.mxu0 %vm230_vm0, %v224_v7 }
  0x8d   : > { %v225_v8 = vpop.trf.xlu0 }
  0x8e   : > { %560 = vmatmul.mubr.msk.bf16.gmra.mrb[4].mxu0 %vm230_vm0, %v225_v8 }
  0x91   : > { %v226_v9 = vpop.trf.xlu0 }
  0x92   : > { %563 = vmatprep.mubr.msk.bf16.mxu1 %vm230_vm0, %v226_v9 }
  0x95   : > { %v227_v10 = vpop.trf.xlu0 }
  0x96   : > { %564 = vmatmul.mubr.msk.bf16.vlgmr.msra.gmra.mrb[0].mxu1 %vm230_vm0, %v227_v10 }
  0x99   : > { %v228_v11 = vpop.trf.xlu0 }
  0x9a   : > { %567 = vmatprep.mubr.msk.bf16.mxu1 %vm230_vm0, %v228_v11 }
  0x9d   : > { %v229_v12 = vpop.trf.xlu0 }
  0x9e   : > { %568 = vmatmul.mubr.msk.bf16.gmra.mrb[4].mxu1 %vm230_vm0, %v229_v12 }
 0x159   : > { %v557_v15 = vpop.f32.mrb[0].mxu0 }
 0x15a   : > { %v354_v17 = vadd.f32 %v557_v15, %v176_v13  ;;  %v289_v18 = vpop.f32.mrb[1].mxu0 }
 0x15b   : > { %v352_v20 = vadd.f32 %v289_v18, %v174_v14  ;;  %v558_v21 = vpop.f32.mrb[2].mxu0 }
 0x15c   : > { %370 = vst [vmem:[#allocation2 + $0x10] sm:$0xff] %v354_v17  ;;  %v355_v22 = vadd.f32 %v558_v21, %v177_v16  ;;  %v292_v23 = vpop.f32.mrb[3].mxu0 }
 0x15d   : > { %368 = vst [vmem:[#allocation2] sm:$0xff] %v352_v20  ;;  %v353_v24 = vadd.f32 %v292_v23, %v175_v19 }
 0x15e   : > { %371 = vst [vmem:[#allocation2 + $0x18] sm:$0xff] %v355_v22 }
 0x15f   : > { %369 = vst [vmem:[#allocation2 + $0x8] sm:$0xff] %v353_v24 }
 0x161   : > { %v561_v27 = vpop.f32.mrb[4].mxu0 }
 0x162   : > { %v358_v29 = vadd.f32 %v561_v27, %v180_v25  ;;  %v305_v30 = vpop.f32.mrb[5].mxu0 }
 0x163   : > { %v356_v32 = vadd.f32 %v305_v30, %v178_v26  ;;  %v562_v33 = vpop.f32.mrb[6].mxu0  ;;  %v390_v63 = vld [vmem:[#allocation2 + $0x10] sm:$0xff] (!%p531_p8) }
 0x164   : > { %374 = vst [vmem:[#allocation2 + $0x30] sm:$0xff] %v358_v29  ;;  %v359_v34 = vadd.f32 %v562_v33, %v181_v28  ;;  %v308_v35 = vpop.f32.mrb[7].mxu0  ;;  %v388_v61 = vld [vmem:[#allocation2] sm:$0xff] (!%p531_p8)  ;;  %v406_v2 = vmul.f32 (!%p531_p8), 0.0078125, %v390_v63 }
 0x165   : > { %372 = vst [vmem:[#allocation2 + $0x20] sm:$0xff] %v356_v32  ;;  %v357_v36 = vadd.f32 %v308_v35, %v179_v31  ;;  %v404_v0 = vmul.f32 (!%p531_p8), 0.0078125, %v388_v61  ;;  %v391_v3 = vld [vmem:[#allocation2 + $0x18] sm:$0xff] (!%p531_p8) }
 0x166   : > { %375 = vst [vmem:[#allocation2 + $0x38] sm:$0xff] %v359_v34  ;;  %v389_v62 = vld [vmem:[#allocation2 + $0x8] sm:$0xff] (!%p531_p8)  ;;  %v407_v6 = vmul.f32 (!%p531_p8), 0.0078125, %v391_v3  ;;  %422 = vst [vmem:[%s712_s19 + $0x10] sm:$0xff] (!%p531_p8), %v406_v2 }
 0x167   : > { %373 = vst [vmem:[#allocation2 + $0x28] sm:$0xff] %v357_v36  ;;  %v405_v1 = vmul.f32 (!%p531_p8), 0.0078125, %v389_v62  ;;  %420 = vst [vmem:[%s712_s19] sm:$0xff] (!%p531_p8), %v404_v0 }
 0x168   : > { %423 = vst [vmem:[%s712_s19 + $0x18] sm:$0xff] (!%p531_p8), %v407_v6 }
 0x169   : > { %v565_v39 = vpop.f32.mrb[0].mxu1  ;;  %421 = vst [vmem:[%s712_s19 + $0x8] sm:$0xff] (!%p531_p8), %v405_v1 }
 0x16a   : > { %v362_v41 = vadd.f32 %v565_v39, %v184_v37  ;;  %v321_v42 = vpop.f32.mrb[1].mxu1 }
 0x16b   : > { %v360_v44 = vadd.f32 %v321_v42, %v182_v38  ;;  %v566_v45 = vpop.f32.mrb[2].mxu1  ;;  %v394_v9 = vld [vmem:[#allocation2 + $0x30] sm:$0xff] (!%p531_p8) }
 0x16c   : > { %378 = vst [vmem:[#allocation2 + $0x50] sm:$0xff] %v362_v41  ;;  %v363_v46 = vadd.f32 %v566_v45, %v185_v40  ;;  %v324_v47 = vpop.f32.mrb[3].mxu1  ;;  %v392_v4 = vld [vmem:[#allocation2 + $0x20] sm:$0xff] (!%p531_p8)  ;;  %v410_v12 = vmul.f32 (!%p531_p8), 0.0078125, %v394_v9 }
 0x16d   : > { %376 = vst [vmem:[#allocation2 + $0x40] sm:$0xff] %v360_v44  ;;  %v361_v48 = vadd.f32 %v324_v47, %v183_v43  ;;  %v408_v7 = vmul.f32 (!%p531_p8), 0.0078125, %v392_v4  ;;  %v395_v10 = vld [vmem:[#allocation2 + $0x38] sm:$0xff] (!%p531_p8) }
 0x16e   : > { %379 = vst [vmem:[#allocation2 + $0x58] sm:$0xff] %v363_v46  ;;  %v393_v5 = vld [vmem:[#allocation2 + $0x28] sm:$0xff] (!%p531_p8)  ;;  %v411_v13 = vmul.f32 (!%p531_p8), 0.0078125, %v395_v10  ;;  %426 = vst [vmem:[%s712_s19 + $0x30] sm:$0xff] (!%p531_p8), %v410_v12 }
 0x16f   : > { %377 = vst [vmem:[#allocation2 + $0x48] sm:$0xff] %v361_v48  ;;  %v409_v8 = vmul.f32 (!%p531_p8), 0.0078125, %v393_v5  ;;  %424 = vst [vmem:[%s712_s19 + $0x20] sm:$0xff] (!%p531_p8), %v408_v7 }
 0x170   : > { %427 = vst [vmem:[%s712_s19 + $0x38] sm:$0xff] (!%p531_p8), %v411_v13 }
 0x171   : > { %v569_v51 = vpop.f32.mrb[4].mxu1  ;;  %387 = sbr.rel (%p531_p8) target bundleno = 386 (0x182), region = 32  ;;  %425 = vst [vmem:[%s712_s19 + $0x28] sm:$0xff] (!%p531_p8), %v409_v8 }
 0x172   : > { %v366_v53 = vadd.f32 %v569_v51, %v188_v49  ;;  %v337_v54 = vpop.f32.mrb[5].mxu1 }
 0x173   : > { %v364_v56 = vadd.f32 %v337_v54, %v186_v50  ;;  %v570_v57 = vpop.f32.mrb[6].mxu1  ;;  %v398_v16 = vld [vmem:[#allocation2 + $0x50] sm:$0xff] (!%p531_p8) }
 0x174   : > { %382 = vst [vmem:[#allocation2 + $0x70] sm:$0xff] %v366_v53  ;;  %v367_v58 = vadd.f32 %v570_v57, %v189_v52  ;;  %v340_v59 = vpop.f32.mrb[7].mxu1  ;;  %v396_v11 = vld [vmem:[#allocation2 + $0x40] sm:$0xff] (!%p531_p8)  ;;  %v414_v19 = vmul.f32 (!%p531_p8), 0.0078125, %v398_v16 }
 0x175   : > { %380 = vst [vmem:[#allocation2 + $0x60] sm:$0xff] %v364_v56  ;;  %v365_v60 = vadd.f32 %v340_v59, %v187_v55  ;;  %v412_v14 = vmul.f32 (!%p531_p8), 0.0078125, %v396_v11  ;;  %v399_v17 = vld [vmem:[#allocation2 + $0x58] sm:$0xff] (!%p531_p8) }
 0x176   : > { %383 = vst [vmem:[#allocation2 + $0x78] sm:$0xff] %v367_v58  ;;  %v397_v15 = vld [vmem:[#allocation2 + $0x48] sm:$0xff] (!%p531_p8)  ;;  %v415_v20 = vmul.f32 (!%p531_p8), 0.0078125, %v399_v17  ;;  %430 = vst [vmem:[%s712_s19 + $0x50] sm:$0xff] (!%p531_p8), %v414_v19 }
 0x177   : > { %381 = vst [vmem:[#allocation2 + $0x68] sm:$0xff] %v365_v60  ;;  %v413_v18 = vmul.f32 (!%p531_p8), 0.0078125, %v397_v15  ;;  %428 = vst [vmem:[%s712_s19 + $0x40] sm:$0xff] (!%p531_p8), %v412_v14 }
 0x178   : > { %431 = vst [vmem:[%s712_s19 + $0x58] sm:$0xff] %v415_v20 }
 0x179   : > { %429 = vst [vmem:[%s712_s19 + $0x48] sm:$0xff] %v413_v18 }
 0x17b   : > { %v402_v23 = vld [vmem:[#allocation2 + $0x70] sm:$0xff] }
 0x17c   : > { %v400_v21 = vld [vmem:[#allocation2 + $0x60] sm:$0xff]  ;;  %v418_v26 = vmul.f32 0.0078125, %v402_v23 }
 0x17d   : > { %v416_v24 = vmul.f32 0.0078125, %v400_v21  ;;  %v403_v27 = vld [vmem:[#allocation2 + $0x78] sm:$0xff] }
 0x17e   : > { %v401_v22 = vld [vmem:[#allocation2 + $0x68] sm:$0xff]  ;;  %v419_v28 = vmul.f32 0.0078125, %v403_v27  ;;  %434 = vst [vmem:[%s712_s19 + $0x70] sm:$0xff] %v418_v26 }
 0x17f   : > { %v417_v25 = vmul.f32 0.0078125, %v401_v22  ;;  %432 = vst [vmem:[%s712_s19 + $0x60] sm:$0xff] %v416_v24 }
 0x180   : > { %435 = vst [vmem:[%s712_s19 + $0x78] sm:$0xff] %v419_v28 }
 0x181   : > { %433 = vst [vmem:[%s712_s19 + $0x68] sm:$0xff] %v417_v25 }
 0x182 PF: > { %s11_s10 = sadd.s32 1, %s663_s10   ;;  %s766_s6 = smov %s655_s8 }
 0x183   : > { %p8_p9 = scmp.ge.s32.totalorder %s11_s10, 6   ;;  %s767_s7 = smov %s659_s9 }
 0x184   : > { %s768_s8 = smov %s771_s11  ;;  %s769_s9 = smov %s775_s12 }
 0x185   :  { %10 = sbr.rel (!%p8_p9) target bundleno = 3 (0x3), region = 62 }

// kernel: nonlocal_block_forward.3
= control target key start
LH: loop header
LB: loop body
LE: loop exit
PB: predicated region body
PF: predicated region fallthrough
CT: control target
= control target key end

     0   :  { %s941_s12 = smov 0   ;;  %s1022_s0 = inlined_call_operand.vmem [shape: bf16[1024,128], index: 0, kind: input, shape index: {}]   ;;  %s1023_s1 = inlined_call_operand.vmem [shape: bf16[128,128], index: 1, kind: input, shape index: {}]   ;;  %s1024_s2 = inlined_call_operand.vmem [shape: f32[1,128], index: 2, kind: input, shape index: {}]   ;;  %s1025_s3 = inlined_call_operand.vmem [shape: bf16[32,8,128], index: 3, kind: output, shape index: {}]  }
   0x1 LB: > { %s734_s13 = sadd.s32 4294967295, %s919_s12   ;;  %p738_p0 = scmp.ge.s32.totalorder %s919_s12, 1  ;;  %s919_s12 = sphi %s941_s12, %s13_s12  }
   0x2   : > { %p138_p1 = scmp.lt.s32.totalorder %s919_s12, 5 }
   0x4   : > { %p139_p2 = pnand %p738_p0, %p138_p1 }
   0x5   : > { %v889_v0 = vld [vmem:[%s1023_s1] sm:$0xff] (!%p139_p2)   ;;  %s739_s16 = sshll.u32 (!%p139_p2), %s734_s13, 5  ;;  %v890_v1 = vld [vmem:[%s1023_s1 + $0x8] sm:$0xff] (!%p139_p2)   ;;  %v891_v2 = vld [vmem:[%s1023_s1 + $0x10] sm:$0xff] (!%p139_p2)   ;;  %s998_s8 = sshll.u32 (!%p139_p2), %s734_s13, 3 }
   0x6   : > { %142 = sbr.rel (%p139_p2) target bundleno = 296 (0x128), region = 32  ;;  %p163_p3 = scmp.lt.s32.totalorder (!%p139_p2), %s739_s16, 127  ;;  %817 = vmatprep.subr.bf16.mxu0 (!%p139_p2), %v889_v0  ;;  %865 = vmatprep.subr.bf16.mxu1 (!%p139_p2), %v889_v0  ;;  %v892_v3 = vld [vmem:[%s1023_s1 + $0x18] sm:$0xff] (!%p139_p2)   ;;  %v893_v6 = vld [vmem:[%s1023_s1 + $0x20] sm:$0xff] (!%p139_p2)   ;;  %v894_v7 = vld [vmem:[%s1023_s1 + $0x28] sm:$0xff] (!%p139_p2)  }
   0x7   : > { %818 = vmatpush3.bf16.msra.mxu0 (!%p139_p2), %v889_v0  ;;  %873 = vmatpush3.bf16.msra.mxu1 (!%p139_p2), %v889_v0  ;;  %v895_v8 = vld [vmem:[%s1023_s1 + $0x30] sm:$0xff] (!%p139_p2)   ;;  %v896_v9 = vld [vmem:[%s1023_s1 + $0x38] sm:$0xff] (!%p139_p2)   ;;  %p169_p4 = scmp.lt.s32.totalorder (!%p139_p2), %s998_s8, 31 }
   0x8   : > { %819 = vmatprep.subr.bf16.mxu0 (!%p139_p2), %v890_v1  ;;  %866 = vmatprep.subr.bf16.mxu1 (!%p139_p2), %v890_v1 }
   0xb   : > { %820 = vmatpush3.bf16.msra.mxu0 (!%p139_p2), %v890_v1  ;;  %874 = vmatpush3.bf16.msra.mxu1 (!%p139_p2), %v890_v1 }
   0xc   : > { %821 = vmatprep.subr.bf16.mxu0 (!%p139_p2), %v891_v2  ;;  %867 = vmatprep.subr.bf16.mxu1 (!%p139_p2), %v891_v2 }
   0xd   : > { %s1027_s16 = smov (!%p163_p3, %s739_s16), 127  ;;  %s1029_s8 = smov (!%p169_p4, %s998_s8), 31 }
   0xe   : > { %s740_s21 = sshll.u32 %s1027_s16, 2  ;;  %s742_s11 = sshll.u32 %s1029_s8, 2 }
   0xf   : > { %s963_s24 = scalar_lea.vmem %s1022_s0, %s740_s21  ;;  %822 = vmatpush3.bf16.msra.mxu0 %v891_v2  ;;  %875 = vmatpush3.bf16.msra.mxu1 %v891_v2  ;;  %s1013_s15 = scalar_lea.vmem %s1025_s3, %s742_s11 }
  0x10   : > { %v897_v4 = vld [vmem:[%s963_s24] sm:$0xff]   ;;  %823 = vmatprep.subr.bf16.mxu0 %v892_v3  ;;  %868 = vmatprep.subr.bf16.mxu1 %v892_v3  ;;  %v899_v10 = vld [vmem:[%s963_s24 + $0x8] sm:$0xff]   ;;  %v901_v12 = vld [vmem:[%s963_s24 + $0x10] sm:$0xff]  }
  0x11   : > { %v898_v5 = vld [vmem:[%s963_s24 + $0x40] sm:$0xff]   ;;  %833 = vmatprep.mubr.bf16.mxu0 %v897_v4  ;;  %v900_v11 = vld [vmem:[%s963_s24 + $0x48] sm:$0xff]   ;;  %v902_v13 = vld [vmem:[%s963_s24 + $0x50] sm:$0xff]  }
  0x12   : > { %849 = vmatprep.mubr.bf16.mxu1 %v898_v5  ;;  %v903_v14 = vld [vmem:[%s963_s24 + $0x18] sm:$0xff]   ;;  %v905_v16 = vld [vmem:[%s963_s24 + $0x20] sm:$0xff]   ;;  %v907_v18 = vld [vmem:[%s963_s24 + $0x28] sm:$0xff]  }
  0x13   : > { %824 = vmatpush3.bf16.msra.mxu0 %v892_v3  ;;  %876 = vmatpush3.bf16.msra.mxu1 %v892_v3  ;;  %v904_v15 = vld [vmem:[%s963_s24 + $0x58] sm:$0xff]   ;;  %v906_v17 = vld [vmem:[%s963_s24 + $0x60] sm:$0xff]   ;;  %v908_v19 = vld [vmem:[%s963_s24 + $0x68] sm:$0xff]  }
  0x14   : > { %825 = vmatprep.subr.bf16.mxu0 %v893_v6  ;;  %869 = vmatprep.subr.bf16.mxu1 %v893_v6  ;;  %v909_v20 = vld [vmem:[%s963_s24 + $0x30] sm:$0xff]   ;;  %v911_v22 = vld [vmem:[%s963_s24 + $0x38] sm:$0xff]  }
  0x15   : > { %v910_v21 = vld [vmem:[%s963_s24 + $0x70] sm:$0xff]   ;;  %v912_v23 = vld [vmem:[%s963_s24 + $0x78] sm:$0xff]  }
  0x17   : > { %826 = vmatpush3.bf16.msra.mxu0 %v893_v6  ;;  %877 = vmatpush3.bf16.msra.mxu1 %v893_v6 }
  0x18   : > { %827 = vmatprep.subr.bf16.mxu0 %v894_v7  ;;  %870 = vmatprep.subr.bf16.mxu1 %v894_v7 }
  0x1b   : > { %828 = vmatpush3.bf16.msra.mxu0 %v894_v7  ;;  %878 = vmatpush3.bf16.msra.mxu1 %v894_v7 }
  0x1c   : > { %829 = vmatprep.subr.bf16.mxu0 %v895_v8  ;;  %871 = vmatprep.subr.bf16.mxu1 %v895_v8 }
  0x1f   : > { %830 = vmatpush3.bf16.msra.mxu0 %v895_v8  ;;  %879 = vmatpush3.bf16.msra.mxu1 %v895_v8  ;;  %v767_v8 = vld [vmem:[%s1024_s2] ss:$0 sm:$0xff] }
  0x20   : > { %831 = vmatprep.subr.bf16.mxu0 %v896_v9  ;;  %872 = vmatprep.subr.bf16.mxu1 %v896_v9 }
  0x23   : > { %832 = vmatpush3.bf16.msra.mxu0 %v896_v9  ;;  %880 = vmatpush3.bf16.msra.mxu1 %v896_v9 }
  0x26   : > { %834 = vmatmul.mubr.bf16.vlgmr.msra.gmra.mrb[0].mxu0 %v899_v10  ;;  %850 = vmatmul.mubr.bf16.vlgmr.msra.gmra.mrb[0].mxu1 %v900_v11 }
  0x27   : > { %837 = vmatprep.mubr.bf16.mxu0 %v901_v12  ;;  %853 = vmatprep.mubr.bf16.mxu1 %v902_v13 }
  0x2e   : > { %838 = vmatmul.mubr.bf16.gmra.mrb[4].mxu0 %v903_v14  ;;  %854 = vmatmul.mubr.bf16.gmra.mrb[4].mxu1 %v904_v15 }
  0x2f   : > { %841 = vmatprep.mubr.bf16.mxu0 %v905_v16  ;;  %857 = vmatprep.mubr.bf16.mxu1 %v906_v17 }
  0x36   : > { %842 = vmatmul.mubr.bf16.gmra.mrb[8].mxu0 %v907_v18  ;;  %858 = vmatmul.mubr.bf16.gmra.mrb[8].mxu1 %v908_v19 }
  0x37   : > { %845 = vmatprep.mubr.bf16.mxu0 %v909_v20  ;;  %861 = vmatprep.mubr.bf16.mxu1 %v910_v21 }
  0x3e   : > { %846 = vmatmul.mubr.bf16.gmra.mrb[12].mxu0 %v911_v22  ;;  %862 = vmatmul.mubr.bf16.gmra.mrb[12].mxu1 %v912_v23 }
  0xf9   : > { %v835_v24 = vpop.f32.mrb[0].mxu0  ;;  %v851_v25 = vpop.f32.mrb[0].mxu1 }
  0xfa   : > { %530 = vst [vmem:[#allocation2 + $0x10] sm:$0xff] %v835_v24  ;;  %546 = vst [vmem:[#allocation2 + $0x90] sm:$0xff] %v851_v25  ;;  %v401_v26 = vpop.f32.mrb[1].mxu0  ;;  %v465_v27 = vpop.f32.mrb[1].mxu1 }
  0xfb   : > { %528 = vst [vmem:[#allocation2] sm:$0xff] %v401_v26  ;;  %544 = vst [vmem:[#allocation2 + $0x80] sm:$0xff] %v465_v27  ;;  %v836_v28 = vpop.f32.mrb[2].mxu0  ;;  %v852_v29 = vpop.f32.mrb[2].mxu1 }
  0xfc   : > { %531 = vst [vmem:[#allocation2 + $0x18] sm:$0xff] %v836_v28  ;;  %547 = vst [vmem:[#allocation2 + $0x98] sm:$0xff] %v852_v29  ;;  %v404_v30 = vpop.f32.mrb[3].mxu0  ;;  %v468_v31 = vpop.f32.mrb[3].mxu1 }
  0xfd   : > { %529 = vst [vmem:[#allocation2 + $0x8] sm:$0xff] %v404_v30  ;;  %545 = vst [vmem:[#allocation2 + $0x88] sm:$0xff] %v468_v31 }
 0x101   : > { %v839_v32 = vpop.f32.mrb[4].mxu0  ;;  %v855_v33 = vpop.f32.mrb[4].mxu1 }
 0x102   : > { %534 = vst [vmem:[#allocation2 + $0x30] sm:$0xff] %v839_v32  ;;  %550 = vst [vmem:[#allocation2 + $0xb0] sm:$0xff] %v855_v33  ;;  %v417_v34 = vpop.f32.mrb[5].mxu0  ;;  %v481_v35 = vpop.f32.mrb[5].mxu1 }
 0x103   : > { %532 = vst [vmem:[#allocation2 + $0x20] sm:$0xff] %v417_v34  ;;  %548 = vst [vmem:[#allocation2 + $0xa0] sm:$0xff] %v481_v35  ;;  %v840_v36 = vpop.f32.mrb[6].mxu0  ;;  %v856_v37 = vpop.f32.mrb[6].mxu1  ;;  %v562_v40 = vld [vmem:[#allocation2 + $0x10] ss:$2 sm:$0xff] }
 0x104   : > { %535 = vst [vmem:[#allocation2 + $0x38] sm:$0xff] %v840_v36  ;;  %551 = vst [vmem:[#allocation2 + $0xb8] sm:$0xff] %v856_v37  ;;  %v420_v38 = vpop.f32.mrb[7].mxu0  ;;  %v484_v39 = vpop.f32.mrb[7].mxu1  ;;  %v594_v41 = vld [vmem:[#allocation2 + $0x11] ss:$2 sm:$0xff] }
 0x105   : > { %v578_v42 = vld [vmem:[#allocation2 + $0x90] ss:$2 sm:$0xff]  ;;  %533 = vst [vmem:[#allocation2 + $0x28] sm:$0xff] %v420_v38  ;;  %549 = vst [vmem:[#allocation2 + $0xa8] sm:$0xff] %v484_v39  ;;  %v610_v43 = vld [vmem:[#allocation2 + $0x91] ss:$2 sm:$0xff]  ;;  %v624_v52 = vmax.f32 %v562_v40, %v594_v41 }
 0x106   : > { %v560_v44 = vld [vmem:[#allocation2] ss:$2 sm:$0xff]  ;;  %v592_v45 = vld [vmem:[#allocation2 + $0x1] ss:$2 sm:$0xff]  ;;  %v632_v56 = vmax.f32 %v578_v42, %v610_v43 }
 0x107   : > { %v576_v46 = vld [vmem:[#allocation2 + $0x80] ss:$2 sm:$0xff]  ;;  %v608_v47 = vld [vmem:[#allocation2 + $0x81] ss:$2 sm:$0xff]  ;;  %v623_v53 = vmax.f32 %v560_v44, %v592_v45 }
 0x108   : > { %v631_v57 = vmax.f32 %v576_v46, %v608_v47 }
 0x109   : > { %v843_v48 = vpop.f32.mrb[8].mxu0  ;;  %v859_v49 = vpop.f32.mrb[8].mxu1  ;;  %v639_v3 = vmax.f32 %v623_v53, %v624_v52 }
 0x10a   : > { %538 = vst [vmem:[#allocation2 + $0x50] sm:$0xff] %v843_v48  ;;  %554 = vst [vmem:[#allocation2 + $0xd0] sm:$0xff] %v859_v49  ;;  %v433_v50 = vpop.f32.mrb[9].mxu0  ;;  %v497_v51 = vpop.f32.mrb[9].mxu1  ;;  %v643_v9 = vmax.f32 %v631_v57, %v632_v56 }
 0x10b   : > { %536 = vst [vmem:[#allocation2 + $0x40] sm:$0xff] %v433_v50  ;;  %552 = vst [vmem:[#allocation2 + $0xc0] sm:$0xff] %v497_v51  ;;  %v844_v54 = vpop.f32.mrb[10].mxu0  ;;  %v860_v55 = vpop.f32.mrb[10].mxu1  ;;  %v566_v60 = vld [vmem:[#allocation2 + $0x30] ss:$2 sm:$0xff]  ;;  %v654_v17 = vadd.f32 %v767_v8, %v639_v3 }
 0x10c   : > { %539 = vst [vmem:[#allocation2 + $0x58] sm:$0xff] %v844_v54  ;;  %555 = vst [vmem:[#allocation2 + $0xd8] sm:$0xff] %v860_v55  ;;  %v436_v58 = vpop.f32.mrb[11].mxu0  ;;  %v500_v59 = vpop.f32.mrb[11].mxu1  ;;  %v598_v61 = vld [vmem:[#allocation2 + $0x31] ss:$2 sm:$0xff]  ;;  %v658_v19 = vadd.f32 %v767_v8, %v643_v9 }
 0x10d   : > { %v582_v62 = vld [vmem:[#allocation2 + $0xb0] ss:$2 sm:$0xff]  ;;  %537 = vst [vmem:[#allocation2 + $0x48] sm:$0xff] %v436_v58  ;;  %553 = vst [vmem:[#allocation2 + $0xc8] sm:$0xff] %v500_v59  ;;  %v626_v63 = vmax.f32 %v566_v60, %v598_v61  ;;  %v614_v0 = vld [vmem:[#allocation2 + $0xb1] ss:$2 sm:$0xff] }
 0x10e   : > { %v564_v1 = vld [vmem:[#allocation2 + $0x20] ss:$2 sm:$0xff]  ;;  %v596_v2 = vld [vmem:[#allocation2 + $0x21] ss:$2 sm:$0xff]  ;;  %v634_v4 = vmax.f32 %v582_v62, %v614_v0 }
 0x10f   : > { %v625_v5 = vmax.f32 %v564_v1, %v596_v2  ;;  %v580_v6 = vld [vmem:[#allocation2 + $0xa0] ss:$2 sm:$0xff]  ;;  %v612_v7 = vld [vmem:[#allocation2 + $0xa1] ss:$2 sm:$0xff] }
 0x110   : > { %v633_v10 = vmax.f32 %v580_v6, %v612_v7 }
 0x111   : > { %v640_v11 = vmax.f32 %v625_v5, %v626_v63  ;;  %v847_v12 = vpop.f32.mrb[12].mxu0  ;;  %v863_v13 = vpop.f32.mrb[12].mxu1 }
 0x112   : > { %v644_v14 = vmax.f32 %v633_v10, %v634_v4  ;;  %542 = vst [vmem:[#allocation2 + $0x70] sm:$0xff] %v847_v12  ;;  %558 = vst [vmem:[#allocation2 + $0xf0] sm:$0xff] %v863_v13  ;;  %v449_v15 = vpop.f32.mrb[13].mxu0  ;;  %v513_v16 = vpop.f32.mrb[13].mxu1 }
 0x113   : > { %v655_v18 = vadd.f32 %v767_v8, %v640_v11  ;;  %540 = vst [vmem:[#allocation2 + $0x60] sm:$0xff] %v449_v15  ;;  %556 = vst [vmem:[#allocation2 + $0xe0] sm:$0xff] %v513_v16  ;;  %v848_v22 = vpop.f32.mrb[14].mxu0  ;;  %v864_v23 = vpop.f32.mrb[14].mxu1  ;;  %v570_v27 = vld [vmem:[#allocation2 + $0x50] ss:$2 sm:$0xff] }
 0x114   : > { %v659_v20 = vadd.f32 %v767_v8, %v644_v14  ;;  %543 = vst [vmem:[#allocation2 + $0x78] sm:$0xff] %v848_v22  ;;  %559 = vst [vmem:[#allocation2 + $0xf8] sm:$0xff] %v864_v23  ;;  %v452_v25 = vpop.f32.mrb[15].mxu0  ;;  %v516_v26 = vpop.f32.mrb[15].mxu1  ;;  %v602_v28 = vld [vmem:[#allocation2 + $0x51] ss:$2 sm:$0xff] }
 0x115   : > { %v773_v21 = vpack.c.bf16 %v655_v18, %v654_v17  ;;  %541 = vst [vmem:[#allocation2 + $0x68] sm:$0xff] %v452_v25  ;;  %557 = vst [vmem:[#allocation2 + $0xe8] sm:$0xff] %v516_v26  ;;  %v586_v29 = vld [vmem:[#allocation2 + $0xd0] ss:$2 sm:$0xff]  ;;  %v568_v30 = vld [vmem:[#allocation2 + $0x40] ss:$2 sm:$0xff]  ;;  %v628_v35 = vmax.f32 %v570_v27, %v602_v28 }
 0x116   : > { %v783_v24 = vpack.c.bf16 %v659_v20, %v658_v19  ;;  %v600_v31 = vld [vmem:[#allocation2 + $0x41] ss:$2 sm:$0xff]  ;;  %v618_v32 = vld [vmem:[#allocation2 + $0xd1] ss:$2 sm:$0xff]  ;;  %v584_v33 = vld [vmem:[#allocation2 + $0xc0] ss:$2 sm:$0xff] }
 0x117   : > { %774 = vst [vmem:[%s1013_s15] sm:$0xff] %v773_v21   ;;  %v616_v34 = vld [vmem:[#allocation2 + $0xc1] ss:$2 sm:$0xff]  ;;  %v627_v36 = vmax.f32 %v568_v30, %v600_v31  ;;  %v636_v37 = vmax.f32 %v586_v29, %v618_v32 }
 0x118   : > { %791 = vst [vmem:[%s1013_s15 + $0x10] sm:$0xff] %v783_v24   ;;  %v635_v38 = vmax.f32 %v584_v33, %v616_v34 }
 0x119   : > { %v641_v46 = vmax.f32 %v627_v36, %v628_v35 }
 0x11a   : > { %v645_v51 = vmax.f32 %v635_v38, %v636_v37 }
 0x11b   : > { %v574_v39 = vld [vmem:[#allocation2 + $0x70] ss:$2 sm:$0xff]  ;;  %v606_v40 = vld [vmem:[#allocation2 + $0x71] ss:$2 sm:$0xff]  ;;  %v656_v55 = vadd.f32 %v767_v8, %v641_v46 }
 0x11c   : > { %v590_v41 = vld [vmem:[#allocation2 + $0xf0] ss:$2 sm:$0xff]  ;;  %v630_v42 = vmax.f32 %v574_v39, %v606_v40  ;;  %v622_v43 = vld [vmem:[#allocation2 + $0xf1] ss:$2 sm:$0xff]  ;;  %v572_v44 = vld [vmem:[#allocation2 + $0x60] ss:$2 sm:$0xff]  ;;  %v660_v57 = vadd.f32 %v767_v8, %v645_v51 }
 0x11d   : > { %v604_v45 = vld [vmem:[#allocation2 + $0x61] ss:$2 sm:$0xff]  ;;  %v638_v47 = vmax.f32 %v590_v41, %v622_v43  ;;  %v588_v49 = vld [vmem:[#allocation2 + $0xe0] ss:$2 sm:$0xff] }
 0x11e   : > { %v629_v48 = vmax.f32 %v572_v44, %v604_v45  ;;  %v620_v50 = vld [vmem:[#allocation2 + $0xe1] ss:$2 sm:$0xff] }
 0x11f   : > { %v637_v52 = vmax.f32 %v588_v49, %v620_v50 }
 0x120   : > { %v642_v53 = vmax.f32 %v629_v48, %v630_v42 }
 0x121   : > { %v646_v54 = vmax.f32 %v637_v52, %v638_v47 }
 0x122   : > { %v657_v56 = vadd.f32 %v767_v8, %v642_v53 }
 0x123   : > { %v661_v58 = vadd.f32 %v767_v8, %v646_v54 }
 0x124   : > { %v778_v59 = vpack.c.bf16 %v657_v56, %v656_v55 }
 0x125   : > { %v788_v60 = vpack.c.bf16 %v661_v58, %v660_v57 }
 0x126   : > { %790 = vst [vmem:[%s1013_s15 + $0x8] sm:$0xff] %v778_v59  }
 0x127   : > { %792 = vst [vmem:[%s1013_s15 + $0x18] sm:$0xff] %v788_v60  }
 0x128 PF: > { %s13_s12 = sadd.s32 1, %s919_s12  }
 0x129   : > { %p10_p5 = scmp.ge.s32.totalorder %s13_s12, 6  }
 0x12b   :  { %12 = sbr.rel (!%p10_p5) target bundleno = 1 (0x1), region = 93 }

// kernel: nonlocal_block_forward.5
= control target key start
LH: loop header
LB: loop body
LE: loop exit
PB: predicated region body
PF: predicated region fallthrough
CT: control target
= control target key end

     0   :  { %s1368_s12 = smov 0   ;;  %s1370_s13 = smov 0   ;;  %s1586_s0 = inlined_call_operand.vmem [shape: bf16[2,512,128], index: 0, kind: input, shape index: {}, may-alias: {0,3}]   ;;  %s1587_s1 = inlined_call_operand.vmem [shape: bf16[2,128,128], index: 1, kind: input, shape index: {}]   ;;  %s1588_s2 = inlined_call_operand.vmem [shape: f32[2,1,128], index: 2, kind: input, shape index: {}]   ;;  %s1589_s3 = inlined_call_operand.vmem [shape: bf16[2,512,128], index: 3, kind: output, shape index: {}, may-alias: {0,3}]  }
   0x1   :  { %s1372_s14 = smov 0   ;;  %s1374_s15 = smov 0  }
   0x2   :  { %s1376_s16 = smov 0  }
   0x3 LB: > { %s22_s17 = sadd.s32 1, %s1338_s14  ;;  %s25_s18 = sadd.s32 1, %s1342_s15  ;;  %s1346_s16 = sphi %s1376_s16, %s13_s16   ;;  %s1342_s15 = sphi %s1374_s15, %s1593_s15   ;;  %s1338_s14 = sphi %s1372_s14, %s1592_s14   ;;  %s1334_s13 = sphi %s1370_s13, %s1591_s13   ;;  %s1330_s12 = sphi %s1368_s12, %s1590_s12  }
   0x4   : > { %p23_p0 = scmp.ge.s32.totalorder %s22_s17, 2  ;;  %p944_p1 = scmp.ge.s32.totalorder %s1346_s16, 1 }
   0x5   : > { %p176_p2 = scmp.lt.s32.totalorder %s1346_s16, 5 }
   0x6   : > { %s1595_s17 = smov (%p23_p0, %s22_s17), 0  ;;  %s1597_s18 = smov (!%p23_p0, %s25_s18), %s1342_s15 }
   0x7   : > { %p177_p3 = pnand %p944_p1, %p176_p2  ;;  %p27_p4 = scmp.ge.s32.totalorder %s1597_s18, 2 }
   0x8   : > { %s945_s19 = sshll.u32 (!%p177_p3), %s1330_s12, 5  ;;  %p217_p5 = scmp.lt.s32.totalorder (!%p177_p3), %s1334_s13, 1 }
   0x9   : > { %s1599_s18 = smov (%p27_p4, %s1597_s18), 0  ;;  %180 = sbr.rel (%p177_p3) target bundleno = 298 (0x12a), region = 32 }
   0xa   : > { %p219_p6 = scmp.lt.s32.totalorder (!%p177_p3), %s945_s19, 63 }
  0x10   : > { %s1601_s13 = smov (!%p217_p5, %s1334_s13), 1  ;;  %s1603_s19 = smov (!%p219_p6, %s945_s19), 63 }
  0x11   : > { %s946_s20 = sshll.u32 %s1601_s13, 6  ;;  %s233_s4 = scalar_lea.vmem %s1588_s2, %s1601_s13 }
  0x12   : > { %s1401_s21 = sadd.s32 %s946_s20, %s1603_s19  ;;  %s1406_s24 = scalar_lea.vmem %s1587_s1, %s946_s20  ;;  %v1486_v24 = vld [vmem:[%s233_s4] ss:$0 sm:$0xff] }
  0x13   : > { %v1268_v0 = vld [vmem:[%s1406_s24] sm:$0xff]   ;;  %v1269_v1 = vld [vmem:[%s1406_s24 + $0x8] sm:$0xff]   ;;  %s947_s25 = sshll.u32 %s1401_s21, 2  ;;  %v1270_v2 = vld [vmem:[%s1406_s24 + $0x10] sm:$0xff]  }
  0x14   : > { %1164 = vmatprep.subr.bf16.mxu0 %v1268_v0  ;;  %1212 = vmatprep.subr.bf16.mxu1 %v1268_v0  ;;  %s1417_s28 = scalar_lea.vmem %s1586_s0, %s947_s25  ;;  %v1271_v3 = vld [vmem:[%s1406_s24 + $0x18] sm:$0xff]   ;;  %v1272_v6 = vld [vmem:[%s1406_s24 + $0x20] sm:$0xff]   ;;  %v1273_v7 = vld [vmem:[%s1406_s24 + $0x28] sm:$0xff]   ;;  %s1505_s7 = scalar_lea.vmem %s1589_s3, %s947_s25 }
  0x15   : > { %1165 = vmatpush3.bf16.msra.mxu0 %v1268_v0  ;;  %1220 = vmatpush3.bf16.msra.mxu1 %v1268_v0  ;;  %v1421_v4 = vld [vmem:[%s1417_s28] sm:$0xff]   ;;  %v1274_v8 = vld [vmem:[%s1406_s24 + $0x30] sm:$0xff]   ;;  %v1275_v9 = vld [vmem:[%s1406_s24 + $0x38] sm:$0xff]  }
  0x16   : > { %1166 = vmatprep.subr.bf16.mxu0 %v1269_v1  ;;  %1213 = vmatprep.subr.bf16.mxu1 %v1269_v1  ;;  %v1424_v5 = vld [vmem:[%s1417_s28 + $0x40] sm:$0xff]   ;;  %v247_v10 = vld [vmem:[%s1417_s28 + $0x8] sm:$0xff]   ;;  %v1435_v12 = vld [vmem:[%s1417_s28 + $0x10] sm:$0xff]   ;;  %v605_v29 = vunpack.c.l.bf16 %v1421_v4  ;;  %v606_v41 = vunpack.c.h.bf16 %v1421_v4 }
  0x17   : > { %1180 = vmatprep.mubr.bf16.mxu0 %v1421_v4  ;;  %1196 = vmatprep.mubr.bf16.mxu1 %v1424_v5  ;;  %v263_v11 = vld [vmem:[%s1417_s28 + $0x48] sm:$0xff]   ;;  %v1438_v13 = vld [vmem:[%s1417_s28 + $0x50] sm:$0xff]   ;;  %v1443_v14 = vld [vmem:[%s1417_s28 + $0x18] sm:$0xff]   ;;  %v607_v26 = vunpack.c.l.bf16 %v247_v10  ;;  %v621_v30 = vunpack.c.l.bf16 %v1424_v5  ;;  %v608_v35 = vunpack.c.h.bf16 %v247_v10  ;;  %v622_v42 = vunpack.c.h.bf16 %v1424_v5 }
  0x18   : > { %v1446_v15 = vld [vmem:[%s1417_s28 + $0x58] sm:$0xff]   ;;  %v1449_v16 = vld [vmem:[%s1417_s28 + $0x20] sm:$0xff]   ;;  %v1459_v18 = vld [vmem:[%s1417_s28 + $0x28] sm:$0xff]   ;;  %v623_v28 = vunpack.c.l.bf16 %v263_v11  ;;  %v624_v36 = vunpack.c.h.bf16 %v263_v11  ;;  %v611_v59 = vunpack.c.l.bf16 %v1443_v14 }
  0x19   : > { %1167 = vmatpush3.bf16.msra.mxu0 %v1269_v1  ;;  %1221 = vmatpush3.bf16.msra.mxu1 %v1269_v1  ;;  %v1452_v17 = vld [vmem:[%s1417_s28 + $0x60] sm:$0xff]   ;;  %v1462_v19 = vld [vmem:[%s1417_s28 + $0x68] sm:$0xff]   ;;  %v1465_v20 = vld [vmem:[%s1417_s28 + $0x30] sm:$0xff]   ;;  %v627_v60 = vunpack.c.l.bf16 %v1446_v15  ;;  %v609_v1 = vunpack.c.l.bf16 %v1435_v12 }
  0x1a   : > { %1168 = vmatprep.subr.bf16.mxu0 %v1270_v2  ;;  %1214 = vmatprep.subr.bf16.mxu1 %v1270_v2  ;;  %v1468_v21 = vld [vmem:[%s1417_s28 + $0x70] sm:$0xff]   ;;  %v1475_v22 = vld [vmem:[%s1417_s28 + $0x38] sm:$0xff]  }
  0x1b   : > { %v1478_v23 = vld [vmem:[%s1417_s28 + $0x78] sm:$0xff]  }
  0x1d   : > { %1169 = vmatpush3.bf16.msra.mxu0 %v1270_v2  ;;  %1222 = vmatpush3.bf16.msra.mxu1 %v1270_v2  ;;  %v625_v2 = vunpack.c.l.bf16 %v1438_v13 }
  0x1e   : > { %1170 = vmatprep.subr.bf16.mxu0 %v1271_v3  ;;  %1215 = vmatprep.subr.bf16.mxu1 %v1271_v3 }
  0x21   : > { %1171 = vmatpush3.bf16.msra.mxu0 %v1271_v3  ;;  %1223 = vmatpush3.bf16.msra.mxu1 %v1271_v3 }
  0x22   : > { %1172 = vmatprep.subr.bf16.mxu0 %v1272_v6  ;;  %1216 = vmatprep.subr.bf16.mxu1 %v1272_v6 }
  0x25   : > { %1173 = vmatpush3.bf16.msra.mxu0 %v1272_v6  ;;  %1224 = vmatpush3.bf16.msra.mxu1 %v1272_v6 }
  0x26   : > { %1174 = vmatprep.subr.bf16.mxu0 %v1273_v7  ;;  %1217 = vmatprep.subr.bf16.mxu1 %v1273_v7 }
  0x29   : > { %1175 = vmatpush3.bf16.msra.mxu0 %v1273_v7  ;;  %1225 = vmatpush3.bf16.msra.mxu1 %v1273_v7  ;;  %v612_v7 = vunpack.c.h.bf16 %v1443_v14 }
  0x2a   : > { %1176 = vmatprep.subr.bf16.mxu0 %v1274_v8  ;;  %1218 = vmatprep.subr.bf16.mxu1 %v1274_v8 }
  0x2d   : > { %1177 = vmatpush3.bf16.msra.mxu0 %v1274_v8  ;;  %1226 = vmatpush3.bf16.msra.mxu1 %v1274_v8  ;;  %v628_v8 = vunpack.c.h.bf16 %v1446_v15 }
  0x2e   : > { %1178 = vmatprep.subr.bf16.mxu0 %v1275_v9  ;;  %1219 = vmatprep.subr.bf16.mxu1 %v1275_v9 }
  0x31   : > { %1179 = vmatpush3.bf16.msra.mxu0 %v1275_v9  ;;  %1227 = vmatpush3.bf16.msra.mxu1 %v1275_v9 }
  0x34   : > { %1181 = vmatmul.mubr.bf16.vlgmr.msra.gmra.mrb[0].mxu0 %v247_v10  ;;  %1197 = vmatmul.mubr.bf16.vlgmr.msra.gmra.mrb[0].mxu1 %v263_v11 }
  0x35   : > { %1184 = vmatprep.mubr.bf16.mxu0 %v1435_v12  ;;  %1200 = vmatprep.mubr.bf16.mxu1 %v1438_v13 }
  0x3c   : > { %1185 = vmatmul.mubr.bf16.gmra.mrb[4].mxu0 %v1443_v14  ;;  %1201 = vmatmul.mubr.bf16.gmra.mrb[4].mxu1 %v1446_v15 }
  0x3d   : > { %1188 = vmatprep.mubr.bf16.mxu0 %v1449_v16  ;;  %1204 = vmatprep.mubr.bf16.mxu1 %v1452_v17 }
  0x44   : > { %1189 = vmatmul.mubr.bf16.gmra.mrb[8].mxu0 %v1459_v18  ;;  %1205 = vmatmul.mubr.bf16.gmra.mrb[8].mxu1 %v1462_v19 }
  0x45   : > { %1192 = vmatprep.mubr.bf16.mxu0 %v1465_v20  ;;  %1208 = vmatprep.mubr.bf16.mxu1 %v1468_v21 }
  0x4c   : > { %1193 = vmatmul.mubr.bf16.gmra.mrb[12].mxu0 %v1475_v22  ;;  %1209 = vmatmul.mubr.bf16.gmra.mrb[12].mxu1 %v1478_v23 }
 0x107   : > { %v1182_v25 = vpop.f32.mrb[0].mxu0  ;;  %v1198_v27 = vpop.f32.mrb[0].mxu1 }
 0x108   : > { %v487_v31 = vadd.f32 %v1182_v25, %v1486_v24  ;;  %v551_v32 = vadd.f32 %v1198_v27, %v1486_v24  ;;  %v478_v33 = vpop.f32.mrb[1].mxu0  ;;  %v542_v34 = vpop.f32.mrb[1].mxu1  ;;  %v626_v27 = vunpack.c.h.bf16 %v1438_v13 }
 0x109   : > { %v479_v37 = vadd.f32 %v1486_v24, %v478_v33  ;;  %v543_v38 = vadd.f32 %v1486_v24, %v542_v34  ;;  %v1183_v39 = vpop.f32.mrb[2].mxu0  ;;  %v1199_v40 = vpop.f32.mrb[2].mxu1 }
 0x10a   : > { %v490_v43 = vadd.f32 %v1183_v39, %v1486_v24  ;;  %v554_v44 = vadd.f32 %v1199_v40, %v1486_v24  ;;  %v481_v45 = vpop.f32.mrb[3].mxu0  ;;  %v545_v46 = vpop.f32.mrb[3].mxu1  ;;  %v639_v49 = vadd.f32 %v607_v26, %v487_v31  ;;  %v655_v50 = vadd.f32 %v623_v28, %v551_v32 }
 0x10b   : > { %v482_v47 = vadd.f32 %v1486_v24, %v481_v45  ;;  %v546_v48 = vadd.f32 %v1486_v24, %v545_v46  ;;  %v637_v53 = vadd.f32 %v605_v29, %v479_v37  ;;  %v653_v54 = vadd.f32 %v621_v30, %v543_v38 }
 0x10c   : > { %v640_v51 = vadd.f32 %v608_v35, %v490_v43  ;;  %v656_v52 = vadd.f32 %v624_v36, %v554_v44  ;;  %v610_v26 = vunpack.c.h.bf16 %v1435_v12  ;;  %v615_v40 = vunpack.c.l.bf16 %v1459_v18 }
 0x10d   : > { %v638_v55 = vadd.f32 %v606_v41, %v482_v47  ;;  %v654_v56 = vadd.f32 %v622_v42, %v546_v48  ;;  %v631_v41 = vunpack.c.l.bf16 %v1462_v19  ;;  %v613_v46 = vunpack.c.l.bf16 %v1449_v16 }
 0x10e   : > { %v1053_v57 = vpack.c.bf16 %v640_v51, %v639_v49  ;;  %v1093_v58 = vpack.c.bf16 %v656_v52, %v655_v50  ;;  %v629_v47 = vunpack.c.l.bf16 %v1452_v17  ;;  %v616_v52 = vunpack.c.h.bf16 %v1459_v18 }
 0x10f   : > { %v1048_v61 = vpack.c.bf16 %v638_v55, %v637_v53  ;;  %v1088_v62 = vpack.c.bf16 %v654_v56, %v653_v54  ;;  %v1186_v63 = vpop.f32.mrb[4].mxu0  ;;  %v1202_v0 = vpop.f32.mrb[4].mxu1  ;;  %v632_v53 = vunpack.c.h.bf16 %v1462_v19 }
 0x110   : > { %1125 = vst [vmem:[%s1505_s7 + $0x8] sm:$0xff] %v1053_v57   ;;  %1133 = vst [vmem:[%s1505_s7 + $0x48] sm:$0xff] %v1093_v58   ;;  %v503_v3 = vadd.f32 %v1186_v63, %v1486_v24  ;;  %v567_v4 = vadd.f32 %v1202_v0, %v1486_v24  ;;  %v494_v5 = vpop.f32.mrb[5].mxu0  ;;  %v558_v6 = vpop.f32.mrb[5].mxu1  ;;  %v614_v58 = vunpack.c.h.bf16 %v1449_v16 }
 0x111   : > { %1049 = vst [vmem:[%s1505_s7] sm:$0xff] %v1048_v61   ;;  %1132 = vst [vmem:[%s1505_s7 + $0x40] sm:$0xff] %v1088_v62   ;;  %v495_v9 = vadd.f32 %v1486_v24, %v494_v5  ;;  %v559_v10 = vadd.f32 %v1486_v24, %v558_v6  ;;  %v1187_v11 = vpop.f32.mrb[6].mxu0  ;;  %v1203_v25 = vpop.f32.mrb[6].mxu1 }
 0x112   : > { %v506_v28 = vadd.f32 %v1187_v11, %v1486_v24  ;;  %v570_v29 = vadd.f32 %v1203_v25, %v1486_v24  ;;  %v497_v30 = vpop.f32.mrb[7].mxu0  ;;  %v561_v14 = vpop.f32.mrb[7].mxu1  ;;  %v643_v32 = vadd.f32 %v611_v59, %v503_v3  ;;  %v659_v33 = vadd.f32 %v627_v60, %v567_v4 }
 0x113   : > { %v498_v15 = vadd.f32 %v1486_v24, %v497_v30  ;;  %v562_v31 = vadd.f32 %v1486_v24, %v561_v14  ;;  %v641_v36 = vadd.f32 %v609_v1, %v495_v9  ;;  %v657_v12 = vadd.f32 %v625_v2, %v559_v10 }
 0x114   : > { %v644_v34 = vadd.f32 %v612_v7, %v506_v28  ;;  %v660_v35 = vadd.f32 %v628_v8, %v570_v29  ;;  %v630_v59 = vunpack.c.h.bf16 %v1452_v17  ;;  %v619_v8 = vunpack.c.l.bf16 %v1475_v22 }
 0x115   : > { %v642_v37 = vadd.f32 %v610_v26, %v498_v15  ;;  %v658_v13 = vadd.f32 %v626_v27, %v562_v31  ;;  %v635_v9 = vunpack.c.l.bf16 %v1478_v23  ;;  %v617_v27 = vunpack.c.l.bf16 %v1465_v20 }
 0x116   : > { %v1063_v38 = vpack.c.bf16 %v644_v34, %v643_v32  ;;  %v1103_v39 = vpack.c.bf16 %v660_v35, %v659_v33  ;;  %v633_v28 = vunpack.c.l.bf16 %v1468_v21  ;;  %v620_v31 = vunpack.c.h.bf16 %v1475_v22 }
 0x117   : > { %v1058_v42 = vpack.c.bf16 %v642_v37, %v641_v36  ;;  %v1098_v43 = vpack.c.bf16 %v658_v13, %v657_v12  ;;  %v1190_v44 = vpop.f32.mrb[8].mxu0  ;;  %v1206_v45 = vpop.f32.mrb[8].mxu1  ;;  %v636_v32 = vunpack.c.h.bf16 %v1478_v23  ;;  %v618_v12 = vunpack.c.h.bf16 %v1465_v20 }
 0x118   : > { %1127 = vst [vmem:[%s1505_s7 + $0x18] sm:$0xff] %v1063_v38   ;;  %1135 = vst [vmem:[%s1505_s7 + $0x58] sm:$0xff] %v1103_v39   ;;  %v519_v48 = vadd.f32 %v1190_v44, %v1486_v24  ;;  %v583_v49 = vadd.f32 %v1206_v45, %v1486_v24  ;;  %v510_v50 = vpop.f32.mrb[9].mxu0  ;;  %v574_v51 = vpop.f32.mrb[9].mxu1  ;;  %v634_v37 = vunpack.c.h.bf16 %v1468_v21 }
 0x119   : > { %1126 = vst [vmem:[%s1505_s7 + $0x10] sm:$0xff] %v1058_v42   ;;  %1134 = vst [vmem:[%s1505_s7 + $0x50] sm:$0xff] %v1098_v43   ;;  %v511_v54 = vadd.f32 %v1486_v24, %v510_v50  ;;  %v575_v55 = vadd.f32 %v1486_v24, %v574_v51  ;;  %v1191_v56 = vpop.f32.mrb[10].mxu0  ;;  %v1207_v57 = vpop.f32.mrb[10].mxu1 }
 0x11a   : > { %v522_v60 = vadd.f32 %v1191_v56, %v1486_v24  ;;  %v586_v61 = vadd.f32 %v1207_v57, %v1486_v24  ;;  %v513_v62 = vpop.f32.mrb[11].mxu0  ;;  %v577_v18 = vpop.f32.mrb[11].mxu1  ;;  %v647_v0 = vadd.f32 %v615_v40, %v519_v48  ;;  %v663_v1 = vadd.f32 %v631_v41, %v583_v49 }
 0x11b   : > { %v514_v19 = vadd.f32 %v1486_v24, %v513_v62  ;;  %v578_v63 = vadd.f32 %v1486_v24, %v577_v18  ;;  %v645_v4 = vadd.f32 %v613_v46, %v511_v54  ;;  %v661_v16 = vadd.f32 %v629_v47, %v575_v55 }
 0x11c   : > { %v648_v2 = vadd.f32 %v616_v52, %v522_v60  ;;  %v664_v3 = vadd.f32 %v632_v53, %v586_v61 }
 0x11d   : > { %v646_v5 = vadd.f32 %v614_v58, %v514_v19  ;;  %v662_v17 = vadd.f32 %v630_v59, %v578_v63 }
 0x11e   : > { %v1073_v6 = vpack.c.bf16 %v648_v2, %v647_v0  ;;  %v1113_v7 = vpack.c.bf16 %v664_v3, %v663_v1 }
 0x11f   : > { %v1068_v10 = vpack.c.bf16 %v646_v5, %v645_v4  ;;  %v1108_v11 = vpack.c.bf16 %v662_v17, %v661_v16  ;;  %v1194_v25 = vpop.f32.mrb[12].mxu0  ;;  %v1210_v26 = vpop.f32.mrb[12].mxu1 }
 0x120   : > { %1129 = vst [vmem:[%s1505_s7 + $0x28] sm:$0xff] %v1073_v6   ;;  %1137 = vst [vmem:[%s1505_s7 + $0x68] sm:$0xff] %v1113_v7   ;;  %v535_v29 = vadd.f32 %v1194_v25, %v1486_v24  ;;  %v599_v30 = vadd.f32 %v1210_v26, %v1486_v24  ;;  %v526_v14 = vpop.f32.mrb[13].mxu0  ;;  %v590_v15 = vpop.f32.mrb[13].mxu1 }
 0x121   : > { %1128 = vst [vmem:[%s1505_s7 + $0x20] sm:$0xff] %v1068_v10   ;;  %1136 = vst [vmem:[%s1505_s7 + $0x60] sm:$0xff] %v1108_v11   ;;  %v527_v33 = vadd.f32 %v1486_v24, %v526_v14  ;;  %v591_v34 = vadd.f32 %v1486_v24, %v590_v15  ;;  %v1195_v35 = vpop.f32.mrb[14].mxu0  ;;  %v1211_v36 = vpop.f32.mrb[14].mxu1 }
 0x122   : > { %v538_v13 = vadd.f32 %v1195_v35, %v1486_v24  ;;  %v602_v38 = vadd.f32 %v1211_v36, %v1486_v24  ;;  %v529_v39 = vpop.f32.mrb[15].mxu0  ;;  %v593_v22 = vpop.f32.mrb[15].mxu1  ;;  %v651_v41 = vadd.f32 %v619_v8, %v535_v29  ;;  %v667_v42 = vadd.f32 %v635_v9, %v599_v30 }
 0x123   : > { %v530_v23 = vadd.f32 %v1486_v24, %v529_v39  ;;  %v594_v40 = vadd.f32 %v1486_v24, %v593_v22  ;;  %v649_v44 = vadd.f32 %v617_v27, %v527_v33  ;;  %v665_v21 = vadd.f32 %v633_v28, %v591_v34 }
 0x124   : > { %v652_v43 = vadd.f32 %v620_v31, %v538_v13  ;;  %v668_v20 = vadd.f32 %v636_v32, %v602_v38 }
 0x125   : > { %v650_v45 = vadd.f32 %v618_v12, %v530_v23  ;;  %v666_v46 = vadd.f32 %v634_v37, %v594_v40 }
 0x126   : > { %v1083_v47 = vpack.c.bf16 %v652_v43, %v651_v41  ;;  %v1123_v48 = vpack.c.bf16 %v668_v20, %v667_v42 }
 0x127   : > { %v1078_v49 = vpack.c.bf16 %v650_v45, %v649_v44  ;;  %v1118_v50 = vpack.c.bf16 %v666_v46, %v665_v21 }
 0x128   : > { %1131 = vst [vmem:[%s1505_s7 + $0x38] sm:$0xff] %v1083_v47   ;;  %1139 = vst [vmem:[%s1505_s7 + $0x78] sm:$0xff] %v1123_v48  }
 0x129   : > { %1130 = vst [vmem:[%s1505_s7 + $0x30] sm:$0xff] %v1078_v49   ;;  %1138 = vst [vmem:[%s1505_s7 + $0x70] sm:$0xff] %v1118_v50  }
 0x12a PF: > { %s13_s16 = sadd.s32 1, %s1346_s16   ;;  %s1590_s12 = smov %s1338_s14 }
 0x12b   : > { %p10_p7 = scmp.ge.s32.totalorder %s13_s16, 6   ;;  %s1591_s13 = smov %s1342_s15 }
 0x12c   : > { %s1592_s14 = smov %s1595_s17  ;;  %s1593_s15 = smov %s1599_s18 }
 0x12d   :  { %12 = sbr.rel (!%p10_p7) target bundleno = 3 (0x3), region = 68 }

</bundles_post_ra>
